<compile_context>
chip_gen: v7x
topology: tpu7x:2x2x1
jax: 0.10.0
libtpu: 0.0.40
codegen_flags: <defaults>
</compile_context>

<pallas_src>
import functools

import jax
import jax.numpy as jnp
from jax.experimental import pallas as pl
from jax.experimental.pallas import tpu as pltpu


def _wsconv1d_kernel(x_ref, w_ref, b_ref, o_ref, xpad_ref, *,
                     c_in, c_out, ksize, pad, out_len):
    # x_ref    : (BT, C_in, L)           VMEM input tile (NCL, L on lanes)
    # w_ref    : (C_out*C_in*K,)         SMEM weights, scale already folded in
    # b_ref    : (C_out,)                SMEM bias
    # o_ref    : (BT, C_out, L_out)      VMEM output tile
    # xpad_ref : (BT, C_in, L + 2*pad)   VMEM scratch with zero halo
    bt = x_ref.shape[0]
    l_in = x_ref.shape[2]

    # Build the zero halo + payload inside VMEM (no padded x in HBM).  The
    # halo is re-zeroed every step so the kernel stays correct when the batch
    # grid axis is sharded across TensorCores ("parallel").
    if pad > 0:
        halo = jnp.zeros((bt, c_in, pad), dtype=xpad_ref.dtype)
        xpad_ref[:, :, pl.ds(0, pad)] = halo
        xpad_ref[:, :, pl.ds(pad + l_in, pad)] = halo
    xpad_ref[:, :, pl.ds(pad, l_in)] = x_ref[...].astype(xpad_ref.dtype)

    # Hoist the C_in*K shifted tap slices once (shared by every output chan).
    taps = []
    for ci in range(c_in):
        for k in range(ksize):
            taps.append(xpad_ref[:, ci, pl.ds(k, out_len)])

    n_taps = c_in * ksize
    for co in range(c_out):
        base = co * n_taps
        # Start the accumulator from bias + first tap (no zero-fill pass).
        acc = w_ref[base] * taps[0] + b_ref[co]
        for t in range(1, n_taps):
            acc = acc + w_ref[base + t] * taps[t]
        o_ref[:, co, :] = acc.astype(o_ref.dtype)   # lane-dense (L last) store


def wsconv1d(x_ncl, weight, bias, *, stride=1, padding=1, gain=2,
             batch_tile=None):
    """Weight-scaled Conv1d.

    x_ncl  : (N, C_in, L)        float32, PyTorch NCL layout
    weight : (C_out, C_in, K)    float32
    bias   : (C_out,)            float32
    returns: (N, C_out, L_out)   float32, PyTorch NCL layout
    """
    assert stride == 1, "kernel implements stride=1 (module default)"
    n, c_in, length = x_ncl.shape
    c_out, c_in_w, ksize = weight.shape
    assert c_in_w == c_in
    out_len = length + 2 * padding - ksize + 1
    scale = (gain / (c_in * ksize)) ** 0.5

    # Fold the weight-standardization scale into the weights once (conv is
    # linear); flatten to 1-D so SMEM padding stays tiny.
    w_flat = (weight.astype(jnp.float32) * scale).reshape(-1)  # (C_out*C_in*K,)
    b_flat = bias.astype(jnp.float32).reshape(-1)              # (C_out,)

    # Amortize per-grid-step overhead: several batch elements per step.
    if batch_tile is None:
        batch_tile = n if n <= 8 else 8
    n_pad = pl.cdiv(n, batch_tile) * batch_tile
    x_in = x_ncl
    if n_pad != n:
        x_in = jnp.concatenate(
            [x_ncl, jnp.zeros((n_pad - n, c_in, length), x_ncl.dtype)], axis=0)

    kernel = functools.partial(
        _wsconv1d_kernel, c_in=c_in, c_out=c_out, ksize=ksize,
        pad=padding, out_len=out_len)

    out = pl.pallas_call(
        kernel,
        out_shape=jax.ShapeDtypeStruct((n_pad, c_out, out_len), x_ncl.dtype),
        grid_spec=pltpu.PrefetchScalarGridSpec(
            num_scalar_prefetch=0,
            grid=(n_pad // batch_tile,),
            in_specs=[
                pl.BlockSpec((batch_tile, c_in, length), lambda i: (i, 0, 0)),
                pl.BlockSpec(memory_space=pltpu.MemorySpace.SMEM),  # weights
                pl.BlockSpec(memory_space=pltpu.MemorySpace.SMEM),  # bias
            ],
            out_specs=pl.BlockSpec((batch_tile, c_out, out_len),
                                   lambda i: (i, 0, 0)),
            scratch_shapes=[
                pltpu.VMEM((batch_tile, c_in, length + 2 * padding),
                           jnp.float32),
            ],
        ),
        compiler_params=pltpu.CompilerParams(
            dimension_semantics=("parallel",),
        ),
    )(x_in, w_flat, b_flat)

    return out[:n] if n_pad != n else out


def _reference(x_ncl, weight, bias, *, padding=1, gain=2):
    """Pure-JAX reference matching torch.nn.functional.conv1d semantics."""
    n, c_in, length = x_ncl.shape
    c_out, _, ksize = weight.shape
    scale = (gain / (c_in * ksize)) ** 0.5
    xs = x_ncl * scale
    out = jax.lax.conv_general_dilated(
        xs, weight,
        window_strides=(1,),
        padding=[(padding, padding)],
        dimension_numbers=("NCH", "OIH", "NCH"),
    )
    return out + bias.reshape(1, c_out, 1)


if __name__ == "__main__":
    # Small shapes consistent with the module: batch=2, in_ch=4, out_ch=8, L=16.
    key = jax.random.PRNGKey(0)
    kx, kw = jax.random.split(key)

    N, C_IN, C_OUT, L, K = 2, 4, 8, 16, 3

    x = jax.random.normal(kx, (N, C_IN, L), dtype=jnp.float32)
    # nn.init.normal_(weight) -> standard normal; bias zeros.
    weight = jax.random.normal(kw, (C_OUT, C_IN, K), dtype=jnp.float32)
    bias = jnp.zeros((C_OUT,), dtype=jnp.float32)

    y = wsconv1d(x, weight, bias)
    y = jax.block_until_ready(y)

    y_ref = _reference(x, weight, bias)
    assert y.shape == (N, C_OUT, L), y.shape
    assert jnp.allclose(y, y_ref, atol=1e-4, rtol=1e-4), (
        float(jnp.max(jnp.abs(y - y_ref)))
    )

    print("KERNEL_OK")
</pallas_src>

<mosaic_0001>
module attributes {stable_mosaic.version = 11 : i64} {
  func.func @_wsconv1d_kernel(%arg0: i32, %arg1: memref<2x4x16xf32, #tpu.memory_space<vmem>>, %arg2: memref<96xf32, #tpu.memory_space<smem>>, %arg3: memref<8xf32, #tpu.memory_space<smem>>, %arg4: memref<2x8x16xf32, #tpu.memory_space<vmem>>, %arg5: memref<2x4x18xf32, #tpu.memory_space<vmem>>) attributes {dimension_semantics = [#tpu.dimension_semantics<parallel>], iteration_bounds = array<i64: 1>, scalar_prefetch = 0 : i64, scratch_operands = 1 : i64, tpu.core_type = #tpu.core_type<tc>, window_params = [{transform_indices = @transform_0, window_bounds = array<i64: 2, 4, 16>}, {transform_indices = @transform_1, window_bounds = array<i64: 96>}, {transform_indices = @transform_2, window_bounds = array<i64: 8>}, {transform_indices = @transform_3, window_bounds = array<i64: 2, 8, 16>}]} {
    %cst = arith.constant 0.000000e+00 : f32
    %0 = vector.broadcast %cst : f32 to vector<2x4x1xf32>
    %c0 = arith.constant 0 : index
    %c0_0 = arith.constant 0 : index
    %c0_1 = arith.constant 0 : index
    %1 = vector.load %arg5[%c0, %c0_0, %c0_1] : memref<2x4x18xf32, #tpu.memory_space<vmem>>, vector<2x4x1xf32>
    tpu.vector_store %arg5[%c0, %c0_0, %c0_1], %0 {strides = array<i32>} : memref<2x4x18xf32, #tpu.memory_space<vmem>>, vector<2x4x1xf32>,
    %c0_2 = arith.constant 0 : index
    %c0_3 = arith.constant 0 : index
    %c17 = arith.constant 17 : index
    %2 = vector.load %arg5[%c0_2, %c0_3, %c17] : memref<2x4x18xf32, #tpu.memory_space<vmem>>, vector<2x4x1xf32>
    tpu.vector_store %arg5[%c0_2, %c0_3, %c17], %0 {strides = array<i32>} : memref<2x4x18xf32, #tpu.memory_space<vmem>>, vector<2x4x1xf32>,
    %c0_4 = arith.constant 0 : index
    %c0_5 = arith.constant 0 : index
    %c0_6 = arith.constant 0 : index
    %3 = vector.load %arg1[%c0_4, %c0_5, %c0_6] : memref<2x4x16xf32, #tpu.memory_space<vmem>>, vector<2x4x16xf32>
    %c0_7 = arith.constant 0 : index
    %c0_8 = arith.constant 0 : index
    %c1 = arith.constant 1 : index
    %4 = vector.load %arg5[%c0_7, %c0_8, %c1] : memref<2x4x18xf32, #tpu.memory_space<vmem>>, vector<2x4x16xf32>
    tpu.vector_store %arg5[%c0_7, %c0_8, %c1], %3 {strides = array<i32>} : memref<2x4x18xf32, #tpu.memory_space<vmem>>, vector<2x4x16xf32>,
    %c0_9 = arith.constant 0 : index
    %c0_10 = arith.constant 0 : index
    %c0_11 = arith.constant 0 : index
    %5 = vector.load %arg5[%c0_9, %c0_10, %c0_11] : memref<2x4x18xf32, #tpu.memory_space<vmem>>, vector<2x1x16xf32>
    %6 = vector.shape_cast %5 : vector<2x1x16xf32> to vector<2x16xf32>
    %c0_12 = arith.constant 0 : index
    %c0_13 = arith.constant 0 : index
    %c1_14 = arith.constant 1 : index
    %7 = vector.load %arg5[%c0_12, %c0_13, %c1_14] : memref<2x4x18xf32, #tpu.memory_space<vmem>>, vector<2x1x16xf32>
    %8 = vector.shape_cast %7 : vector<2x1x16xf32> to vector<2x16xf32>
    %c0_15 = arith.constant 0 : index
    %c0_16 = arith.constant 0 : index
    %c2 = arith.constant 2 : index
    %9 = vector.load %arg5[%c0_15, %c0_16, %c2] : memref<2x4x18xf32, #tpu.memory_space<vmem>>, vector<2x1x16xf32>
    %10 = vector.shape_cast %9 : vector<2x1x16xf32> to vector<2x16xf32>
    %c0_17 = arith.constant 0 : index
    %c1_18 = arith.constant 1 : index
    %c0_19 = arith.constant 0 : index
    %11 = vector.load %arg5[%c0_17, %c1_18, %c0_19] : memref<2x4x18xf32, #tpu.memory_space<vmem>>, vector<2x1x16xf32>
    %12 = vector.shape_cast %11 : vector<2x1x16xf32> to vector<2x16xf32>
    %c0_20 = arith.constant 0 : index
    %c1_21 = arith.constant 1 : index
    %c1_22 = arith.constant 1 : index
    %13 = vector.load %arg5[%c0_20, %c1_21, %c1_22] : memref<2x4x18xf32, #tpu.memory_space<vmem>>, vector<2x1x16xf32>
    %14 = vector.shape_cast %13 : vector<2x1x16xf32> to vector<2x16xf32>
    %c0_23 = arith.constant 0 : index
    %c1_24 = arith.constant 1 : index
    %c2_25 = arith.constant 2 : index
    %15 = vector.load %arg5[%c0_23, %c1_24, %c2_25] : memref<2x4x18xf32, #tpu.memory_space<vmem>>, vector<2x1x16xf32>
    %16 = vector.shape_cast %15 : vector<2x1x16xf32> to vector<2x16xf32>
    %c0_26 = arith.constant 0 : index
    %c2_27 = arith.constant 2 : index
    %c0_28 = arith.constant 0 : index
    %17 = vector.load %arg5[%c0_26, %c2_27, %c0_28] : memref<2x4x18xf32, #tpu.memory_space<vmem>>, vector<2x1x16xf32>
    %18 = vector.shape_cast %17 : vector<2x1x16xf32> to vector<2x16xf32>
    %c0_29 = arith.constant 0 : index
    %c2_30 = arith.constant 2 : index
    %c1_31 = arith.constant 1 : index
    %19 = vector.load %arg5[%c0_29, %c2_30, %c1_31] : memref<2x4x18xf32, #tpu.memory_space<vmem>>, vector<2x1x16xf32>
    %20 = vector.shape_cast %19 : vector<2x1x16xf32> to vector<2x16xf32>
    %c0_32 = arith.constant 0 : index
    %c2_33 = arith.constant 2 : index
    %c2_34 = arith.constant 2 : index
    %21 = vector.load %arg5[%c0_32, %c2_33, %c2_34] : memref<2x4x18xf32, #tpu.memory_space<vmem>>, vector<2x1x16xf32>
    %22 = vector.shape_cast %21 : vector<2x1x16xf32> to vector<2x16xf32>
    %c0_35 = arith.constant 0 : index
    %c3 = arith.constant 3 : index
    %c0_36 = arith.constant 0 : index
    %23 = vector.load %arg5[%c0_35, %c3, %c0_36] : memref<2x4x18xf32, #tpu.memory_space<vmem>>, vector<2x1x16xf32>
    %24 = vector.shape_cast %23 : vector<2x1x16xf32> to vector<2x16xf32>
    %c0_37 = arith.constant 0 : index
    %c3_38 = arith.constant 3 : index
    %c1_39 = arith.constant 1 : index
    %25 = vector.load %arg5[%c0_37, %c3_38, %c1_39] : memref<2x4x18xf32, #tpu.memory_space<vmem>>, vector<2x1x16xf32>
    %26 = vector.shape_cast %25 : vector<2x1x16xf32> to vector<2x16xf32>
    %c0_40 = arith.constant 0 : index
    %c3_41 = arith.constant 3 : index
    %c2_42 = arith.constant 2 : index
    %27 = vector.load %arg5[%c0_40, %c3_41, %c2_42] : memref<2x4x18xf32, #tpu.memory_space<vmem>>, vector<2x1x16xf32>
    %28 = vector.shape_cast %27 : vector<2x1x16xf32> to vector<2x16xf32>
    %c0_43 = arith.constant 0 : index
    %29 = memref.load %arg2[%c0_43] : memref<96xf32, #tpu.memory_space<smem>>
    %30 = vector.broadcast %29 : f32 to vector<2x16xf32>
    %31 = arith.mulf %30, %6 : vector<2x16xf32>
    %c0_44 = arith.constant 0 : index
    %32 = memref.load %arg3[%c0_44] : memref<8xf32, #tpu.memory_space<smem>>
    %33 = vector.broadcast %32 : f32 to vector<2x16xf32>
    %34 = arith.addf %31, %33 : vector<2x16xf32>
    %c1_45 = arith.constant 1 : index
    %35 = memref.load %arg2[%c1_45] : memref<96xf32, #tpu.memory_space<smem>>
    %36 = vector.broadcast %35 : f32 to vector<2x16xf32>
    %37 = arith.mulf %36, %8 : vector<2x16xf32>
    %38 = arith.addf %34, %37 : vector<2x16xf32>
    %c2_46 = arith.constant 2 : index
    %39 = memref.load %arg2[%c2_46] : memref<96xf32, #tpu.memory_space<smem>>
    %40 = vector.broadcast %39 : f32 to vector<2x16xf32>
    %41 = arith.mulf %40, %10 : vector<2x16xf32>
    %42 = arith.addf %38, %41 : vector<2x16xf32>
    %c3_47 = arith.constant 3 : index
    %43 = memref.load %arg2[%c3_47] : memref<96xf32, #tpu.memory_space<smem>>
    %44 = vector.broadcast %43 : f32 to vector<2x16xf32>
    %45 = arith.mulf %44, %12 : vector<2x16xf32>
    %46 = arith.addf %42, %45 : vector<2x16xf32>
    %c4 = arith.constant 4 : index
    %47 = memref.load %arg2[%c4] : memref<96xf32, #tpu.memory_space<smem>>
    %48 = vector.broadcast %47 : f32 to vector<2x16xf32>
    %49 = arith.mulf %48, %14 : vector<2x16xf32>
    %50 = arith.addf %46, %49 : vector<2x16xf32>
    %c5 = arith.constant 5 : index
    %51 = memref.load %arg2[%c5] : memref<96xf32, #tpu.memory_space<smem>>
    %52 = vector.broadcast %51 : f32 to vector<2x16xf32>
    %53 = arith.mulf %52, %16 : vector<2x16xf32>
    %54 = arith.addf %50, %53 : vector<2x16xf32>
    %c6 = arith.constant 6 : index
    %55 = memref.load %arg2[%c6] : memref<96xf32, #tpu.memory_space<smem>>
    %56 = vector.broadcast %55 : f32 to vector<2x16xf32>
    %57 = arith.mulf %56, %18 : vector<2x16xf32>
    %58 = arith.addf %54, %57 : vector<2x16xf32>
    %c7 = arith.constant 7 : index
    %59 = memref.load %arg2[%c7] : memref<96xf32, #tpu.memory_space<smem>>
    %60 = vector.broadcast %59 : f32 to vector<2x16xf32>
    %61 = arith.mulf %60, %20 : vector<2x16xf32>
    %62 = arith.addf %58, %61 : vector<2x16xf32>
    %c8 = arith.constant 8 : index
    %63 = memref.load %arg2[%c8] : memref<96xf32, #tpu.memory_space<smem>>
    %64 = vector.broadcast %63 : f32 to vector<2x16xf32>
    %65 = arith.mulf %64, %22 : vector<2x16xf32>
    %66 = arith.addf %62, %65 : vector<2x16xf32>
    %c9 = arith.constant 9 : index
    %67 = memref.load %arg2[%c9] : memref<96xf32, #tpu.memory_space<smem>>
    %68 = vector.broadcast %67 : f32 to vector<2x16xf32>
    %69 = arith.mulf %68, %24 : vector<2x16xf32>
    %70 = arith.addf %66, %69 : vector<2x16xf32>
    %c10 = arith.constant 10 : index
    %71 = memref.load %arg2[%c10] : memref<96xf32, #tpu.memory_space<smem>>
    %72 = vector.broadcast %71 : f32 to vector<2x16xf32>
    %73 = arith.mulf %72, %26 : vector<2x16xf32>
    %74 = arith.addf %70, %73 : vector<2x16xf32>
    %c11 = arith.constant 11 : index
    %75 = memref.load %arg2[%c11] : memref<96xf32, #tpu.memory_space<smem>>
    %76 = vector.broadcast %75 : f32 to vector<2x16xf32>
    %77 = arith.mulf %76, %28 : vector<2x16xf32>
    %78 = arith.addf %74, %77 : vector<2x16xf32>
    %c0_48 = arith.constant 0 : index
    %c0_49 = arith.constant 0 : index
    %c0_50 = arith.constant 0 : index
    %79 = vector.load %arg4[%c0_48, %c0_49, %c0_50] : memref<2x8x16xf32, #tpu.memory_space<vmem>>, vector<2x1x16xf32>
    %80 = vector.shape_cast %79 : vector<2x1x16xf32> to vector<2x16xf32>
    %81 = vector.shape_cast %78 : vector<2x16xf32> to vector<2x1x16xf32>
    tpu.vector_store %arg4[%c0_48, %c0_49, %c0_50], %81 {strides = array<i32>} : memref<2x8x16xf32, #tpu.memory_space<vmem>>, vector<2x1x16xf32>,
    %c12 = arith.constant 12 : index
    %82 = memref.load %arg2[%c12] : memref<96xf32, #tpu.memory_space<smem>>
    %83 = vector.broadcast %82 : f32 to vector<2x16xf32>
    %84 = arith.mulf %83, %6 : vector<2x16xf32>
    %c1_51 = arith.constant 1 : index
    %85 = memref.load %arg3[%c1_51] : memref<8xf32, #tpu.memory_space<smem>>
    %86 = vector.broadcast %85 : f32 to vector<2x16xf32>
    %87 = arith.addf %84, %86 : vector<2x16xf32>
    %c13 = arith.constant 13 : index
    %88 = memref.load %arg2[%c13] : memref<96xf32, #tpu.memory_space<smem>>
    %89 = vector.broadcast %88 : f32 to vector<2x16xf32>
    %90 = arith.mulf %89, %8 : vector<2x16xf32>
    %91 = arith.addf %87, %90 : vector<2x16xf32>
    %c14 = arith.constant 14 : index
    %92 = memref.load %arg2[%c14] : memref<96xf32, #tpu.memory_space<smem>>
    %93 = vector.broadcast %92 : f32 to vector<2x16xf32>
    %94 = arith.mulf %93, %10 : vector<2x16xf32>
    %95 = arith.addf %91, %94 : vector<2x16xf32>
    %c15 = arith.constant 15 : index
    %96 = memref.load %arg2[%c15] : memref<96xf32, #tpu.memory_space<smem>>
    %97 = vector.broadcast %96 : f32 to vector<2x16xf32>
    %98 = arith.mulf %97, %12 : vector<2x16xf32>
    %99 = arith.addf %95, %98 : vector<2x16xf32>
    %c16 = arith.constant 16 : index
    %100 = memref.load %arg2[%c16] : memref<96xf32, #tpu.memory_space<smem>>
    %101 = vector.broadcast %100 : f32 to vector<2x16xf32>
    %102 = arith.mulf %101, %14 : vector<2x16xf32>
    %103 = arith.addf %99, %102 : vector<2x16xf32>
    %c17_52 = arith.constant 17 : index
    %104 = memref.load %arg2[%c17_52] : memref<96xf32, #tpu.memory_space<smem>>
    %105 = vector.broadcast %104 : f32 to vector<2x16xf32>
    %106 = arith.mulf %105, %16 : vector<2x16xf32>
    %107 = arith.addf %103, %106 : vector<2x16xf32>
    %c18 = arith.constant 18 : index
    %108 = memref.load %arg2[%c18] : memref<96xf32, #tpu.memory_space<smem>>
    %109 = vector.broadcast %108 : f32 to vector<2x16xf32>
    %110 = arith.mulf %109, %18 : vector<2x16xf32>
    %111 = arith.addf %107, %110 : vector<2x16xf32>
    %c19 = arith.constant 19 : index
    %112 = memref.load %arg2[%c19] : memref<96xf32, #tpu.memory_space<smem>>
    %113 = vector.broadcast %112 : f32 to vector<2x16xf32>
    %114 = arith.mulf %113, %20 : vector<2x16xf32>
    %115 = arith.addf %111, %114 : vector<2x16xf32>
    %c20 = arith.constant 20 : index
    %116 = memref.load %arg2[%c20] : memref<96xf32, #tpu.memory_space<smem>>
    %117 = vector.broadcast %116 : f32 to vector<2x16xf32>
    %118 = arith.mulf %117, %22 : vector<2x16xf32>
    %119 = arith.addf %115, %118 : vector<2x16xf32>
    %c21 = arith.constant 21 : index
    %120 = memref.load %arg2[%c21] : memref<96xf32, #tpu.memory_space<smem>>
    %121 = vector.broadcast %120 : f32 to vector<2x16xf32>
    %122 = arith.mulf %121, %24 : vector<2x16xf32>
    %123 = arith.addf %119, %122 : vector<2x16xf32>
    %c22 = arith.constant 22 : index
    %124 = memref.load %arg2[%c22] : memref<96xf32, #tpu.memory_space<smem>>
    %125 = vector.broadcast %124 : f32 to vector<2x16xf32>
    %126 = arith.mulf %125, %26 : vector<2x16xf32>
    %127 = arith.addf %123, %126 : vector<2x16xf32>
    %c23 = arith.constant 23 : index
    %128 = memref.load %arg2[%c23] : memref<96xf32, #tpu.memory_space<smem>>
    %129 = vector.broadcast %128 : f32 to vector<2x16xf32>
    %130 = arith.mulf %129, %28 : vector<2x16xf32>
    %131 = arith.addf %127, %130 : vector<2x16xf32>
    %c0_53 = arith.constant 0 : index
    %c1_54 = arith.constant 1 : index
    %c0_55 = arith.constant 0 : index
    %132 = vector.load %arg4[%c0_53, %c1_54, %c0_55] : memref<2x8x16xf32, #tpu.memory_space<vmem>>, vector<2x1x16xf32>
    %133 = vector.shape_cast %132 : vector<2x1x16xf32> to vector<2x16xf32>
    %134 = vector.shape_cast %131 : vector<2x16xf32> to vector<2x1x16xf32>
    tpu.vector_store %arg4[%c0_53, %c1_54, %c0_55], %134 {strides = array<i32>} : memref<2x8x16xf32, #tpu.memory_space<vmem>>, vector<2x1x16xf32>,
    %c24 = arith.constant 24 : index
    %135 = memref.load %arg2[%c24] : memref<96xf32, #tpu.memory_space<smem>>
    %136 = vector.broadcast %135 : f32 to vector<2x16xf32>
    %137 = arith.mulf %136, %6 : vector<2x16xf32>
    %c2_56 = arith.constant 2 : index
    %138 = memref.load %arg3[%c2_56] : memref<8xf32, #tpu.memory_space<smem>>
    %139 = vector.broadcast %138 : f32 to vector<2x16xf32>
    %140 = arith.addf %137, %139 : vector<2x16xf32>
    %c25 = arith.constant 25 : index
    %141 = memref.load %arg2[%c25] : memref<96xf32, #tpu.memory_space<smem>>
    %142 = vector.broadcast %141 : f32 to vector<2x16xf32>
    %143 = arith.mulf %142, %8 : vector<2x16xf32>
    %144 = arith.addf %140, %143 : vector<2x16xf32>
    %c26 = arith.constant 26 : index
    %145 = memref.load %arg2[%c26] : memref<96xf32, #tpu.memory_space<smem>>
    %146 = vector.broadcast %145 : f32 to vector<2x16xf32>
    %147 = arith.mulf %146, %10 : vector<2x16xf32>
    %148 = arith.addf %144, %147 : vector<2x16xf32>
    %c27 = arith.constant 27 : index
    %149 = memref.load %arg2[%c27] : memref<96xf32, #tpu.memory_space<smem>>
    %150 = vector.broadcast %149 : f32 to vector<2x16xf32>
    %151 = arith.mulf %150, %12 : vector<2x16xf32>
    %152 = arith.addf %148, %151 : vector<2x16xf32>
    %c28 = arith.constant 28 : index
    %153 = memref.load %arg2[%c28] : memref<96xf32, #tpu.memory_space<smem>>
    %154 = vector.broadcast %153 : f32 to vector<2x16xf32>
    %155 = arith.mulf %154, %14 : vector<2x16xf32>
    %156 = arith.addf %152, %155 : vector<2x16xf32>
    %c29 = arith.constant 29 : index
    %157 = memref.load %arg2[%c29] : memref<96xf32, #tpu.memory_space<smem>>
    %158 = vector.broadcast %157 : f32 to vector<2x16xf32>
    %159 = arith.mulf %158, %16 : vector<2x16xf32>
    %160 = arith.addf %156, %159 : vector<2x16xf32>
    %c30 = arith.constant 30 : index
    %161 = memref.load %arg2[%c30] : memref<96xf32, #tpu.memory_space<smem>>
    %162 = vector.broadcast %161 : f32 to vector<2x16xf32>
    %163 = arith.mulf %162, %18 : vector<2x16xf32>
    %164 = arith.addf %160, %163 : vector<2x16xf32>
    %c31 = arith.constant 31 : index
    %165 = memref.load %arg2[%c31] : memref<96xf32, #tpu.memory_space<smem>>
    %166 = vector.broadcast %165 : f32 to vector<2x16xf32>
    %167 = arith.mulf %166, %20 : vector<2x16xf32>
    %168 = arith.addf %164, %167 : vector<2x16xf32>
    %c32 = arith.constant 32 : index
    %169 = memref.load %arg2[%c32] : memref<96xf32, #tpu.memory_space<smem>>
    %170 = vector.broadcast %169 : f32 to vector<2x16xf32>
    %171 = arith.mulf %170, %22 : vector<2x16xf32>
    %172 = arith.addf %168, %171 : vector<2x16xf32>
    %c33 = arith.constant 33 : index
    %173 = memref.load %arg2[%c33] : memref<96xf32, #tpu.memory_space<smem>>
    %174 = vector.broadcast %173 : f32 to vector<2x16xf32>
    %175 = arith.mulf %174, %24 : vector<2x16xf32>
    %176 = arith.addf %172, %175 : vector<2x16xf32>
    %c34 = arith.constant 34 : index
    %177 = memref.load %arg2[%c34] : memref<96xf32, #tpu.memory_space<smem>>
    %178 = vector.broadcast %177 : f32 to vector<2x16xf32>
    %179 = arith.mulf %178, %26 : vector<2x16xf32>
    %180 = arith.addf %176, %179 : vector<2x16xf32>
    %c35 = arith.constant 35 : index
    %181 = memref.load %arg2[%c35] : memref<96xf32, #tpu.memory_space<smem>>
    %182 = vector.broadcast %181 : f32 to vector<2x16xf32>
    %183 = arith.mulf %182, %28 : vector<2x16xf32>
    %184 = arith.addf %180, %183 : vector<2x16xf32>
    %c0_57 = arith.constant 0 : index
    %c2_58 = arith.constant 2 : index
    %c0_59 = arith.constant 0 : index
    %185 = vector.load %arg4[%c0_57, %c2_58, %c0_59] : memref<2x8x16xf32, #tpu.memory_space<vmem>>, vector<2x1x16xf32>
    %186 = vector.shape_cast %185 : vector<2x1x16xf32> to vector<2x16xf32>
    %187 = vector.shape_cast %184 : vector<2x16xf32> to vector<2x1x16xf32>
    tpu.vector_store %arg4[%c0_57, %c2_58, %c0_59], %187 {strides = array<i32>} : memref<2x8x16xf32, #tpu.memory_space<vmem>>, vector<2x1x16xf32>,
    %c36 = arith.constant 36 : index
    %188 = memref.load %arg2[%c36] : memref<96xf32, #tpu.memory_space<smem>>
    %189 = vector.broadcast %188 : f32 to vector<2x16xf32>
    %190 = arith.mulf %189, %6 : vector<2x16xf32>
    %c3_60 = arith.constant 3 : index
    %191 = memref.load %arg3[%c3_60] : memref<8xf32, #tpu.memory_space<smem>>
    %192 = vector.broadcast %191 : f32 to vector<2x16xf32>
    %193 = arith.addf %190, %192 : vector<2x16xf32>
    %c37 = arith.constant 37 : index
    %194 = memref.load %arg2[%c37] : memref<96xf32, #tpu.memory_space<smem>>
    %195 = vector.broadcast %194 : f32 to vector<2x16xf32>
    %196 = arith.mulf %195, %8 : vector<2x16xf32>
    %197 = arith.addf %193, %196 : vector<2x16xf32>
    %c38 = arith.constant 38 : index
    %198 = memref.load %arg2[%c38] : memref<96xf32, #tpu.memory_space<smem>>
    %199 = vector.broadcast %198 : f32 to vector<2x16xf32>
    %200 = arith.mulf %199, %10 : vector<2x16xf32>
    %201 = arith.addf %197, %200 : vector<2x16xf32>
    %c39 = arith.constant 39 : index
    %202 = memref.load %arg2[%c39] : memref<96xf32, #tpu.memory_space<smem>>
    %203 = vector.broadcast %202 : f32 to vector<2x16xf32>
    %204 = arith.mulf %203, %12 : vector<2x16xf32>
    %205 = arith.addf %201, %204 : vector<2x16xf32>
    %c40 = arith.constant 40 : index
    %206 = memref.load %arg2[%c40] : memref<96xf32, #tpu.memory_space<smem>>
    %207 = vector.broadcast %206 : f32 to vector<2x16xf32>
    %208 = arith.mulf %207, %14 : vector<2x16xf32>
    %209 = arith.addf %205, %208 : vector<2x16xf32>
    %c41 = arith.constant 41 : index
    %210 = memref.load %arg2[%c41] : memref<96xf32, #tpu.memory_space<smem>>
    %211 = vector.broadcast %210 : f32 to vector<2x16xf32>
    %212 = arith.mulf %211, %16 : vector<2x16xf32>
    %213 = arith.addf %209, %212 : vector<2x16xf32>
    %c42 = arith.constant 42 : index
    %214 = memref.load %arg2[%c42] : memref<96xf32, #tpu.memory_space<smem>>
    %215 = vector.broadcast %214 : f32 to vector<2x16xf32>
    %216 = arith.mulf %215, %18 : vector<2x16xf32>
    %217 = arith.addf %213, %216 : vector<2x16xf32>
    %c43 = arith.constant 43 : index
    %218 = memref.load %arg2[%c43] : memref<96xf32, #tpu.memory_space<smem>>
    %219 = vector.broadcast %218 : f32 to vector<2x16xf32>
    %220 = arith.mulf %219, %20 : vector<2x16xf32>
    %221 = arith.addf %217, %220 : vector<2x16xf32>
    %c44 = arith.constant 44 : index
    %222 = memref.load %arg2[%c44] : memref<96xf32, #tpu.memory_space<smem>>
    %223 = vector.broadcast %222 : f32 to vector<2x16xf32>
    %224 = arith.mulf %223, %22 : vector<2x16xf32>
    %225 = arith.addf %221, %224 : vector<2x16xf32>
    %c45 = arith.constant 45 : index
    %226 = memref.load %arg2[%c45] : memref<96xf32, #tpu.memory_space<smem>>
    %227 = vector.broadcast %226 : f32 to vector<2x16xf32>
    %228 = arith.mulf %227, %24 : vector<2x16xf32>
    %229 = arith.addf %225, %228 : vector<2x16xf32>
    %c46 = arith.constant 46 : index
    %230 = memref.load %arg2[%c46] : memref<96xf32, #tpu.memory_space<smem>>
    %231 = vector.broadcast %230 : f32 to vector<2x16xf32>
    %232 = arith.mulf %231, %26 : vector<2x16xf32>
    %233 = arith.addf %229, %232 : vector<2x16xf32>
    %c47 = arith.constant 47 : index
    %234 = memref.load %arg2[%c47] : memref<96xf32, #tpu.memory_space<smem>>
    %235 = vector.broadcast %234 : f32 to vector<2x16xf32>
    %236 = arith.mulf %235, %28 : vector<2x16xf32>
    %237 = arith.addf %233, %236 : vector<2x16xf32>
    %c0_61 = arith.constant 0 : index
    %c3_62 = arith.constant 3 : index
    %c0_63 = arith.constant 0 : index
    %238 = vector.load %arg4[%c0_61, %c3_62, %c0_63] : memref<2x8x16xf32, #tpu.memory_space<vmem>>, vector<2x1x16xf32>
    %239 = vector.shape_cast %238 : vector<2x1x16xf32> to vector<2x16xf32>
    %240 = vector.shape_cast %237 : vector<2x16xf32> to vector<2x1x16xf32>
    tpu.vector_store %arg4[%c0_61, %c3_62, %c0_63], %240 {strides = array<i32>} : memref<2x8x16xf32, #tpu.memory_space<vmem>>, vector<2x1x16xf32>,
    %c48 = arith.constant 48 : index
    %241 = memref.load %arg2[%c48] : memref<96xf32, #tpu.memory_space<smem>>
    %242 = vector.broadcast %241 : f32 to vector<2x16xf32>
    %243 = arith.mulf %242, %6 : vector<2x16xf32>
    %c4_64 = arith.constant 4 : index
    %244 = memref.load %arg3[%c4_64] : memref<8xf32, #tpu.memory_space<smem>>
    %245 = vector.broadcast %244 : f32 to vector<2x16xf32>
    %246 = arith.addf %243, %245 : vector<2x16xf32>
    %c49 = arith.constant 49 : index
    %247 = memref.load %arg2[%c49] : memref<96xf32, #tpu.memory_space<smem>>
    %248 = vector.broadcast %247 : f32 to vector<2x16xf32>
    %249 = arith.mulf %248, %8 : vector<2x16xf32>
    %250 = arith.addf %246, %249 : vector<2x16xf32>
    %c50 = arith.constant 50 : index
    %251 = memref.load %arg2[%c50] : memref<96xf32, #tpu.memory_space<smem>>
    %252 = vector.broadcast %251 : f32 to vector<2x16xf32>
    %253 = arith.mulf %252, %10 : vector<2x16xf32>
    %254 = arith.addf %250, %253 : vector<2x16xf32>
    %c51 = arith.constant 51 : index
    %255 = memref.load %arg2[%c51] : memref<96xf32, #tpu.memory_space<smem>>
    %256 = vector.broadcast %255 : f32 to vector<2x16xf32>
    %257 = arith.mulf %256, %12 : vector<2x16xf32>
    %258 = arith.addf %254, %257 : vector<2x16xf32>
    %c52 = arith.constant 52 : index
    %259 = memref.load %arg2[%c52] : memref<96xf32, #tpu.memory_space<smem>>
    %260 = vector.broadcast %259 : f32 to vector<2x16xf32>
    %261 = arith.mulf %260, %14 : vector<2x16xf32>
    %262 = arith.addf %258, %261 : vector<2x16xf32>
    %c53 = arith.constant 53 : index
    %263 = memref.load %arg2[%c53] : memref<96xf32, #tpu.memory_space<smem>>
    %264 = vector.broadcast %263 : f32 to vector<2x16xf32>
    %265 = arith.mulf %264, %16 : vector<2x16xf32>
    %266 = arith.addf %262, %265 : vector<2x16xf32>
    %c54 = arith.constant 54 : index
    %267 = memref.load %arg2[%c54] : memref<96xf32, #tpu.memory_space<smem>>
    %268 = vector.broadcast %267 : f32 to vector<2x16xf32>
    %269 = arith.mulf %268, %18 : vector<2x16xf32>
    %270 = arith.addf %266, %269 : vector<2x16xf32>
    %c55 = arith.constant 55 : index
    %271 = memref.load %arg2[%c55] : memref<96xf32, #tpu.memory_space<smem>>
    %272 = vector.broadcast %271 : f32 to vector<2x16xf32>
    %273 = arith.mulf %272, %20 : vector<2x16xf32>
    %274 = arith.addf %270, %273 : vector<2x16xf32>
    %c56 = arith.constant 56 : index
    %275 = memref.load %arg2[%c56] : memref<96xf32, #tpu.memory_space<smem>>
    %276 = vector.broadcast %275 : f32 to vector<2x16xf32>
    %277 = arith.mulf %276, %22 : vector<2x16xf32>
    %278 = arith.addf %274, %277 : vector<2x16xf32>
    %c57 = arith.constant 57 : index
    %279 = memref.load %arg2[%c57] : memref<96xf32, #tpu.memory_space<smem>>
    %280 = vector.broadcast %279 : f32 to vector<2x16xf32>
    %281 = arith.mulf %280, %24 : vector<2x16xf32>
    %282 = arith.addf %278, %281 : vector<2x16xf32>
    %c58 = arith.constant 58 : index
    %283 = memref.load %arg2[%c58] : memref<96xf32, #tpu.memory_space<smem>>
    %284 = vector.broadcast %283 : f32 to vector<2x16xf32>
    %285 = arith.mulf %284, %26 : vector<2x16xf32>
    %286 = arith.addf %282, %285 : vector<2x16xf32>
    %c59 = arith.constant 59 : index
    %287 = memref.load %arg2[%c59] : memref<96xf32, #tpu.memory_space<smem>>
    %288 = vector.broadcast %287 : f32 to vector<2x16xf32>
    %289 = arith.mulf %288, %28 : vector<2x16xf32>
    %290 = arith.addf %286, %289 : vector<2x16xf32>
    %c0_65 = arith.constant 0 : index
    %c4_66 = arith.constant 4 : index
    %c0_67 = arith.constant 0 : index
    %291 = vector.load %arg4[%c0_65, %c4_66, %c0_67] : memref<2x8x16xf32, #tpu.memory_space<vmem>>, vector<2x1x16xf32>
    %292 = vector.shape_cast %291 : vector<2x1x16xf32> to vector<2x16xf32>
    %293 = vector.shape_cast %290 : vector<2x16xf32> to vector<2x1x16xf32>
    tpu.vector_store %arg4[%c0_65, %c4_66, %c0_67], %293 {strides = array<i32>} : memref<2x8x16xf32, #tpu.memory_space<vmem>>, vector<2x1x16xf32>,
    %c60 = arith.constant 60 : index
    %294 = memref.load %arg2[%c60] : memref<96xf32, #tpu.memory_space<smem>>
    %295 = vector.broadcast %294 : f32 to vector<2x16xf32>
    %296 = arith.mulf %295, %6 : vector<2x16xf32>
    %c5_68 = arith.constant 5 : index
    %297 = memref.load %arg3[%c5_68] : memref<8xf32, #tpu.memory_space<smem>>
    %298 = vector.broadcast %297 : f32 to vector<2x16xf32>
    %299 = arith.addf %296, %298 : vector<2x16xf32>
    %c61 = arith.constant 61 : index
    %300 = memref.load %arg2[%c61] : memref<96xf32, #tpu.memory_space<smem>>
    %301 = vector.broadcast %300 : f32 to vector<2x16xf32>
    %302 = arith.mulf %301, %8 : vector<2x16xf32>
    %303 = arith.addf %299, %302 : vector<2x16xf32>
    %c62 = arith.constant 62 : index
    %304 = memref.load %arg2[%c62] : memref<96xf32, #tpu.memory_space<smem>>
    %305 = vector.broadcast %304 : f32 to vector<2x16xf32>
    %306 = arith.mulf %305, %10 : vector<2x16xf32>
    %307 = arith.addf %303, %306 : vector<2x16xf32>
    %c63 = arith.constant 63 : index
    %308 = memref.load %arg2[%c63] : memref<96xf32, #tpu.memory_space<smem>>
    %309 = vector.broadcast %308 : f32 to vector<2x16xf32>
    %310 = arith.mulf %309, %12 : vector<2x16xf32>
    %311 = arith.addf %307, %310 : vector<2x16xf32>
    %c64 = arith.constant 64 : index
    %312 = memref.load %arg2[%c64] : memref<96xf32, #tpu.memory_space<smem>>
    %313 = vector.broadcast %312 : f32 to vector<2x16xf32>
    %314 = arith.mulf %313, %14 : vector<2x16xf32>
    %315 = arith.addf %311, %314 : vector<2x16xf32>
    %c65 = arith.constant 65 : index
    %316 = memref.load %arg2[%c65] : memref<96xf32, #tpu.memory_space<smem>>
    %317 = vector.broadcast %316 : f32 to vector<2x16xf32>
    %318 = arith.mulf %317, %16 : vector<2x16xf32>
    %319 = arith.addf %315, %318 : vector<2x16xf32>
    %c66 = arith.constant 66 : index
    %320 = memref.load %arg2[%c66] : memref<96xf32, #tpu.memory_space<smem>>
    %321 = vector.broadcast %320 : f32 to vector<2x16xf32>
    %322 = arith.mulf %321, %18 : vector<2x16xf32>
    %323 = arith.addf %319, %322 : vector<2x16xf32>
    %c67 = arith.constant 67 : index
    %324 = memref.load %arg2[%c67] : memref<96xf32, #tpu.memory_space<smem>>
    %325 = vector.broadcast %324 : f32 to vector<2x16xf32>
    %326 = arith.mulf %325, %20 : vector<2x16xf32>
    %327 = arith.addf %323, %326 : vector<2x16xf32>
    %c68 = arith.constant 68 : index
    %328 = memref.load %arg2[%c68] : memref<96xf32, #tpu.memory_space<smem>>
    %329 = vector.broadcast %328 : f32 to vector<2x16xf32>
    %330 = arith.mulf %329, %22 : vector<2x16xf32>
    %331 = arith.addf %327, %330 : vector<2x16xf32>
    %c69 = arith.constant 69 : index
    %332 = memref.load %arg2[%c69] : memref<96xf32, #tpu.memory_space<smem>>
    %333 = vector.broadcast %332 : f32 to vector<2x16xf32>
    %334 = arith.mulf %333, %24 : vector<2x16xf32>
    %335 = arith.addf %331, %334 : vector<2x16xf32>
    %c70 = arith.constant 70 : index
    %336 = memref.load %arg2[%c70] : memref<96xf32, #tpu.memory_space<smem>>
    %337 = vector.broadcast %336 : f32 to vector<2x16xf32>
    %338 = arith.mulf %337, %26 : vector<2x16xf32>
    %339 = arith.addf %335, %338 : vector<2x16xf32>
    %c71 = arith.constant 71 : index
    %340 = memref.load %arg2[%c71] : memref<96xf32, #tpu.memory_space<smem>>
    %341 = vector.broadcast %340 : f32 to vector<2x16xf32>
    %342 = arith.mulf %341, %28 : vector<2x16xf32>
    %343 = arith.addf %339, %342 : vector<2x16xf32>
    %c0_69 = arith.constant 0 : index
    %c5_70 = arith.constant 5 : index
    %c0_71 = arith.constant 0 : index
    %344 = vector.load %arg4[%c0_69, %c5_70, %c0_71] : memref<2x8x16xf32, #tpu.memory_space<vmem>>, vector<2x1x16xf32>
    %345 = vector.shape_cast %344 : vector<2x1x16xf32> to vector<2x16xf32>
    %346 = vector.shape_cast %343 : vector<2x16xf32> to vector<2x1x16xf32>
    tpu.vector_store %arg4[%c0_69, %c5_70, %c0_71], %346 {strides = array<i32>} : memref<2x8x16xf32, #tpu.memory_space<vmem>>, vector<2x1x16xf32>,
    %c72 = arith.constant 72 : index
    %347 = memref.load %arg2[%c72] : memref<96xf32, #tpu.memory_space<smem>>
    %348 = vector.broadcast %347 : f32 to vector<2x16xf32>
    %349 = arith.mulf %348, %6 : vector<2x16xf32>
    %c6_72 = arith.constant 6 : index
    %350 = memref.load %arg3[%c6_72] : memref<8xf32, #tpu.memory_space<smem>>
    %351 = vector.broadcast %350 : f32 to vector<2x16xf32>
    %352 = arith.addf %349, %351 : vector<2x16xf32>
    %c73 = arith.constant 73 : index
    %353 = memref.load %arg2[%c73] : memref<96xf32, #tpu.memory_space<smem>>
    %354 = vector.broadcast %353 : f32 to vector<2x16xf32>
    %355 = arith.mulf %354, %8 : vector<2x16xf32>
    %356 = arith.addf %352, %355 : vector<2x16xf32>
    %c74 = arith.constant 74 : index
    %357 = memref.load %arg2[%c74] : memref<96xf32, #tpu.memory_space<smem>>
    %358 = vector.broadcast %357 : f32 to vector<2x16xf32>
    %359 = arith.mulf %358, %10 : vector<2x16xf32>
    %360 = arith.addf %356, %359 : vector<2x16xf32>
    %c75 = arith.constant 75 : index
    %361 = memref.load %arg2[%c75] : memref<96xf32, #tpu.memory_space<smem>>
    %362 = vector.broadcast %361 : f32 to vector<2x16xf32>
    %363 = arith.mulf %362, %12 : vector<2x16xf32>
    %364 = arith.addf %360, %363 : vector<2x16xf32>
    %c76 = arith.constant 76 : index
    %365 = memref.load %arg2[%c76] : memref<96xf32, #tpu.memory_space<smem>>
    %366 = vector.broadcast %365 : f32 to vector<2x16xf32>
    %367 = arith.mulf %366, %14 : vector<2x16xf32>
    %368 = arith.addf %364, %367 : vector<2x16xf32>
    %c77 = arith.constant 77 : index
    %369 = memref.load %arg2[%c77] : memref<96xf32, #tpu.memory_space<smem>>
    %370 = vector.broadcast %369 : f32 to vector<2x16xf32>
    %371 = arith.mulf %370, %16 : vector<2x16xf32>
    %372 = arith.addf %368, %371 : vector<2x16xf32>
    %c78 = arith.constant 78 : index
    %373 = memref.load %arg2[%c78] : memref<96xf32, #tpu.memory_space<smem>>
    %374 = vector.broadcast %373 : f32 to vector<2x16xf32>
    %375 = arith.mulf %374, %18 : vector<2x16xf32>
    %376 = arith.addf %372, %375 : vector<2x16xf32>
    %c79 = arith.constant 79 : index
    %377 = memref.load %arg2[%c79] : memref<96xf32, #tpu.memory_space<smem>>
    %378 = vector.broadcast %377 : f32 to vector<2x16xf32>
    %379 = arith.mulf %378, %20 : vector<2x16xf32>
    %380 = arith.addf %376, %379 : vector<2x16xf32>
    %c80 = arith.constant 80 : index
    %381 = memref.load %arg2[%c80] : memref<96xf32, #tpu.memory_space<smem>>
    %382 = vector.broadcast %381 : f32 to vector<2x16xf32>
    %383 = arith.mulf %382, %22 : vector<2x16xf32>
    %384 = arith.addf %380, %383 : vector<2x16xf32>
    %c81 = arith.constant 81 : index
    %385 = memref.load %arg2[%c81] : memref<96xf32, #tpu.memory_space<smem>>
    %386 = vector.broadcast %385 : f32 to vector<2x16xf32>
    %387 = arith.mulf %386, %24 : vector<2x16xf32>
    %388 = arith.addf %384, %387 : vector<2x16xf32>
    %c82 = arith.constant 82 : index
    %389 = memref.load %arg2[%c82] : memref<96xf32, #tpu.memory_space<smem>>
    %390 = vector.broadcast %389 : f32 to vector<2x16xf32>
    %391 = arith.mulf %390, %26 : vector<2x16xf32>
    %392 = arith.addf %388, %391 : vector<2x16xf32>
    %c83 = arith.constant 83 : index
    %393 = memref.load %arg2[%c83] : memref<96xf32, #tpu.memory_space<smem>>
    %394 = vector.broadcast %393 : f32 to vector<2x16xf32>
    %395 = arith.mulf %394, %28 : vector<2x16xf32>
    %396 = arith.addf %392, %395 : vector<2x16xf32>
    %c0_73 = arith.constant 0 : index
    %c6_74 = arith.constant 6 : index
    %c0_75 = arith.constant 0 : index
    %397 = vector.load %arg4[%c0_73, %c6_74, %c0_75] : memref<2x8x16xf32, #tpu.memory_space<vmem>>, vector<2x1x16xf32>
    %398 = vector.shape_cast %397 : vector<2x1x16xf32> to vector<2x16xf32>
    %399 = vector.shape_cast %396 : vector<2x16xf32> to vector<2x1x16xf32>
    tpu.vector_store %arg4[%c0_73, %c6_74, %c0_75], %399 {strides = array<i32>} : memref<2x8x16xf32, #tpu.memory_space<vmem>>, vector<2x1x16xf32>,
    %c84 = arith.constant 84 : index
    %400 = memref.load %arg2[%c84] : memref<96xf32, #tpu.memory_space<smem>>
    %401 = vector.broadcast %400 : f32 to vector<2x16xf32>
    %402 = arith.mulf %401, %6 : vector<2x16xf32>
    %c7_76 = arith.constant 7 : index
    %403 = memref.load %arg3[%c7_76] : memref<8xf32, #tpu.memory_space<smem>>
    %404 = vector.broadcast %403 : f32 to vector<2x16xf32>
    %405 = arith.addf %402, %404 : vector<2x16xf32>
    %c85 = arith.constant 85 : index
    %406 = memref.load %arg2[%c85] : memref<96xf32, #tpu.memory_space<smem>>
    %407 = vector.broadcast %406 : f32 to vector<2x16xf32>
    %408 = arith.mulf %407, %8 : vector<2x16xf32>
    %409 = arith.addf %405, %408 : vector<2x16xf32>
    %c86 = arith.constant 86 : index
    %410 = memref.load %arg2[%c86] : memref<96xf32, #tpu.memory_space<smem>>
    %411 = vector.broadcast %410 : f32 to vector<2x16xf32>
    %412 = arith.mulf %411, %10 : vector<2x16xf32>
    %413 = arith.addf %409, %412 : vector<2x16xf32>
    %c87 = arith.constant 87 : index
    %414 = memref.load %arg2[%c87] : memref<96xf32, #tpu.memory_space<smem>>
    %415 = vector.broadcast %414 : f32 to vector<2x16xf32>
    %416 = arith.mulf %415, %12 : vector<2x16xf32>
    %417 = arith.addf %413, %416 : vector<2x16xf32>
    %c88 = arith.constant 88 : index
    %418 = memref.load %arg2[%c88] : memref<96xf32, #tpu.memory_space<smem>>
    %419 = vector.broadcast %418 : f32 to vector<2x16xf32>
    %420 = arith.mulf %419, %14 : vector<2x16xf32>
    %421 = arith.addf %417, %420 : vector<2x16xf32>
    %c89 = arith.constant 89 : index
    %422 = memref.load %arg2[%c89] : memref<96xf32, #tpu.memory_space<smem>>
    %423 = vector.broadcast %422 : f32 to vector<2x16xf32>
    %424 = arith.mulf %423, %16 : vector<2x16xf32>
    %425 = arith.addf %421, %424 : vector<2x16xf32>
    %c90 = arith.constant 90 : index
    %426 = memref.load %arg2[%c90] : memref<96xf32, #tpu.memory_space<smem>>
    %427 = vector.broadcast %426 : f32 to vector<2x16xf32>
    %428 = arith.mulf %427, %18 : vector<2x16xf32>
    %429 = arith.addf %425, %428 : vector<2x16xf32>
    %c91 = arith.constant 91 : index
    %430 = memref.load %arg2[%c91] : memref<96xf32, #tpu.memory_space<smem>>
    %431 = vector.broadcast %430 : f32 to vector<2x16xf32>
    %432 = arith.mulf %431, %20 : vector<2x16xf32>
    %433 = arith.addf %429, %432 : vector<2x16xf32>
    %c92 = arith.constant 92 : index
    %434 = memref.load %arg2[%c92] : memref<96xf32, #tpu.memory_space<smem>>
    %435 = vector.broadcast %434 : f32 to vector<2x16xf32>
    %436 = arith.mulf %435, %22 : vector<2x16xf32>
    %437 = arith.addf %433, %436 : vector<2x16xf32>
    %c93 = arith.constant 93 : index
    %438 = memref.load %arg2[%c93] : memref<96xf32, #tpu.memory_space<smem>>
    %439 = vector.broadcast %438 : f32 to vector<2x16xf32>
    %440 = arith.mulf %439, %24 : vector<2x16xf32>
    %441 = arith.addf %437, %440 : vector<2x16xf32>
    %c94 = arith.constant 94 : index
    %442 = memref.load %arg2[%c94] : memref<96xf32, #tpu.memory_space<smem>>
    %443 = vector.broadcast %442 : f32 to vector<2x16xf32>
    %444 = arith.mulf %443, %26 : vector<2x16xf32>
    %445 = arith.addf %441, %444 : vector<2x16xf32>
    %c95 = arith.constant 95 : index
    %446 = memref.load %arg2[%c95] : memref<96xf32, #tpu.memory_space<smem>>
    %447 = vector.broadcast %446 : f32 to vector<2x16xf32>
    %448 = arith.mulf %447, %28 : vector<2x16xf32>
    %449 = arith.addf %445, %448 : vector<2x16xf32>
    %c0_77 = arith.constant 0 : index
    %c7_78 = arith.constant 7 : index
    %c0_79 = arith.constant 0 : index
    %450 = vector.load %arg4[%c0_77, %c7_78, %c0_79] : memref<2x8x16xf32, #tpu.memory_space<vmem>>, vector<2x1x16xf32>
    %451 = vector.shape_cast %450 : vector<2x1x16xf32> to vector<2x16xf32>
    %452 = vector.shape_cast %449 : vector<2x16xf32> to vector<2x1x16xf32>
    tpu.vector_store %arg4[%c0_77, %c7_78, %c0_79], %452 {strides = array<i32>} : memref<2x8x16xf32, #tpu.memory_space<vmem>>, vector<2x1x16xf32>,
    return
  }
  func.func @transform_0(%arg0: i32) -> (i32, i32, i32) {
    %c0_i32 = arith.constant 0 : i32
    %c0_i32_0 = arith.constant 0 : i32
    %c0_i32_1 = arith.constant 0 : i32
    return %arg0, %c0_i32, %c0_i32_0 : i32, i32, i32
  }
  func.func @transform_1(%arg0: i32) -> i32 {
    %c0_i32 = arith.constant 0 : i32
    %c0_i32_0 = arith.constant 0 : i32
    return %c0_i32 : i32
  }
  func.func @transform_2(%arg0: i32) -> i32 {
    %c0_i32 = arith.constant 0 : i32
    %c0_i32_0 = arith.constant 0 : i32
    return %c0_i32 : i32
  }
  func.func @transform_3(%arg0: i32) -> (i32, i32, i32) {
    %c0_i32 = arith.constant 0 : i32
    %c0_i32_0 = arith.constant 0 : i32
    %c0_i32_1 = arith.constant 0 : i32
    return %arg0, %c0_i32, %c0_i32_0 : i32, i32, i32
  }
}

</mosaic_0001>

<bundles_post_ra>
// kernel: tpu_custom_call.1
= control target key start
LH: loop header
LB: loop body
LE: loop exit
PB: predicated region body
PF: predicated region fallthrough
CT: control target
= control target key end

     0   :  { %8 = vsyncpa [#allocation4], 0  ;;  %s2104_s0 = inlined_call_operand.hbm [shape: f32[2,4,16], index: 0, kind: input, shape index: {}]   ;;  %s2105_s1 = inlined_call_operand.vmem [shape: f32[96], index: 1, kind: input, shape index: {}]   ;;  %s2106_s2 = inlined_call_operand.vmem [shape: f32[8], index: 2, kind: input, shape index: {}]   ;;  %s2107_s3 = inlined_call_operand.hbm [shape: f32[2,8,16], index: 3, kind: output, shape index: {}]  }
   0x1   :  { %9 = vsyncpa [#allocation6], 0 }
   0x2   :  { %10 = vsyncpa [#allocation9], 0 }
   0x3   :  { %11 = vsyncpa [#allocation5], 0  ;;  %s1419_s12 = smov [#allocation3]   ;;  %s30_s16 = sshll.u32 %s2105_s1, 4  ;;  %s31_s16 = int_to_ptr.vmem [resolvable:$true] %s30_s16 }
   0x4   :  { %s17_s13 = sshll.u32 %s1419_s12, 4  ;;  %s1343_s19 = scalar_lea.hbm %s2104_s0, 128  ;;  %s18_s13 = int_to_ptr.vmem [resolvable:$true] %s17_s13 }
   0x5   :  { %p1344_p0 = scmp.ne.s32.totalorder %s2104_s0, %s1343_s19  ;;  %p1347_p1 = scmp.lt.u32.totalorder %s1343_s19, %s2104_s0 }
   0x7   :  { %p1349_p2 = pnand %p1347_p1, %p1344_p0 }
   0x9   :  { %1352 = shalt.err (!%p1349_p2)
}
   0xa   :  { %s1353_s24 = scalar_lea.vmem %s18_s13, 128  ;;  %p1358_p4 = scmp.lt.s32.totalorder %s18_s13, %s18_s13 }
   0xb   :  { %p1354_p3 = scmp.ne.s32.totalorder %s18_s13, %s1353_s24  ;;  %p1359_p5 = scmp.lt.s32.totalorder %s1353_s24, %s1353_s24 }
   0xd   :  { %p1360_p6 = por %p1359_p5, %p1358_p4 }
   0xf   :  { %p1361_p7 = pnand %p1360_p6, %p1354_p3 }
  0x11   :  { %1364 = shalt.err (!%p1361_p7)
}
  0x12   :  { %s1420_s1 = smov 64   ;;  %s1421_s25 = smov 4  }
  0x13   :  { %23 = dma.hbm_to_vmem [thread:$0]  %s2104_s0, 128, %s18_s13, [#allocation4], %s1420_s1, %s1420_s1, %s1421_s25  }
  0x14   :  { %s1365_s28 = scalar_lea.vmem %s31_s16, 16  ;;  %p1370_p9 = scmp.lt.s32.totalorder %s31_s16, %s31_s16 }
  0x15   :  { %p1366_p8 = scmp.ne.s32.totalorder %s31_s16, %s1365_s28  ;;  %p1371_p10 = scmp.lt.s32.totalorder %s1365_s28, %s1365_s28 }
  0x17   :  { %p1372_p11 = por %p1371_p10, %p1370_p9 }
  0x19   :  { %p1373_p12 = pnand %p1372_p11, %p1366_p8 }
  0x1b   :  { %1376 = shalt.err (!%p1373_p12)
}
  0x1c   :  { %s1422_s29 = smov [#allocation7]   ;;  %s40_s5 = sshll.u32 %s2106_s2, 4  ;;  %s41_s5 = int_to_ptr.vmem [resolvable:$true] %s40_s5 }
  0x1d   :  { %33 = dma.vmem_to_smem %s31_s16, 16, %s1422_s29, [#allocation6]  }
  0x1e   :  { %s1377_s6 = scalar_lea.vmem %s41_s5, 16  ;;  %p1382_p0 = scmp.lt.s32.totalorder %s41_s5, %s41_s5 }
  0x1f   :  { %p1378_p13 = scmp.ne.s32.totalorder %s41_s5, %s1377_s6  ;;  %p1383_p1 = scmp.lt.s32.totalorder %s1377_s6, %s1377_s6 }
  0x21   :  { %p1384_p2 = por %p1383_p1, %p1382_p0 }
  0x23   :  { %p1385_p3 = pnand %p1384_p2, %p1378_p13 }
  0x25   :  { %1388 = shalt.err (!%p1385_p3)
}
  0x26   :  { %s1423_s0 = smov [#allocation8]  }
  0x27   :  { %43 = dma.vmem_to_smem %s41_s5, 16, %s1423_s0, [#allocation9]  }
  0x28   :  { %1411 = dma.done.wait [#allocation4], 128  }
  0x29   :  { %1412 = vsyncadd [#allocation4], 4294967168 }
  0x2a   :  { %1413 = dma.done.wait [#allocation6], 16  }
  0x2b   :  { %1414 = vsyncadd [#allocation6], 4294967280 }
  0x2c   :  { %1415 = dma.done.wait [#allocation9], 16  }
  0x2d   :  { %1416 = vsyncadd [#allocation9], 4294967280 }
  0x2e   :  { %53 = sfence }
  0x2f   :  { %v60_v0 = vld [vmem:[#allocation3] sm:$0xf]  ;;  %s1424_s7 = smov 1   ;;  %vm54_vm0 = vcmask 3072   ;;  %vm57_vm1 = vcmask 142472   ;;  %v1425_v2 = vmov 0.0  }
  0x30   :  { %64 = vrot.lane.b32.xlu0 %v60_v0, %s1424_s7  ;;  %v61_v1 = vld [vmem:[#allocation3 + $0x4] sm:$0xf]  ;;  %55 = vst.msk [vmem:[#allocation2] sm:$0xf] %vm54_vm0, %v1425_v2  ;;  %56 = vst.msk [vmem:[#allocation2 + $0x4] sm:$0xf] %vm54_vm0, %v1425_v2 }
  0x31   :  { %58 = vst.msk [vmem:[#allocation2] sm:$0xf] %vm57_vm1, %v1425_v2  ;;  %59 = vst.msk [vmem:[#allocation2 + $0x4] sm:$0xf] %vm57_vm1, %v1425_v2  ;;  %vm70_vm2 = vcmask 134152   ;;  %s1222_s2 = sld [smem:[#allocation7 + $0x2]] }
  0x32   :  { %s1221_s8 = sld [smem:[#allocation7 + $0x1]]  ;;  %s1469_s9 = sld [smem:[#allocation7 + $0x4]]  ;;  %vm219_vm3 = vcmask 122880  }
  0x33   :  { %s1471_s10 = sld [smem:[#allocation7 + $0x5]]  ;;  %s1480_s11 = sld [smem:[#allocation7 + $0x7]] }
  0x34   :  { %66 = vrot.lane.b32.xlu0 %v61_v1, %s1424_s7  ;;  %s1426_s12 = smov 126   ;;  %s1427_s13 = smov 127  }
  0x35   :  { %s1489_s14 = sld [smem:[#allocation7 + $0x8]]  ;;  %s1500_s15 = sld [smem:[#allocation7 + $0xa]] }
  0x36   :  { %s1507_s16 = sld [smem:[#allocation7 + $0xb]]  ;;  %s1234_s17 = sld [smem:[#allocation7 + $0xd]] }
  0x37   :  { %v104_v5 = vstv %s1222_s2  ;;  %s1235_s18 = sld [smem:[#allocation7 + $0xe]]  ;;  %s1237_s19 = sld [smem:[#allocation7 + $0x10]] }
  0x38   :  { %v90_v6 = vstv %s1221_s8  ;;  %v124_v11 = vstv %s1469_s9  ;;  %s1238_s20 = sld [smem:[#allocation7 + $0x11]]  ;;  %s1240_s21 = sld [smem:[#allocation7 + $0x13]] }
  0x39   :  { %v138_v15 = vstv %s1471_s10  ;;  %v158_v20 = vstv %s1480_s11  ;;  %s1241_s22 = sld [smem:[#allocation7 + $0x14]]  ;;  %s1243_s23 = sld [smem:[#allocation7 + $0x16]] }
  0x3a   :  { %s1244_s24 = sld [smem:[#allocation7 + $0x17]]  ;;  %s1247_s1 = sld [smem:[#allocation7 + $0x19]] }
  0x3b   :  { %v172_v23 = vstv %s1489_s14  ;;  %v192_v28 = vstv %s1500_s15  ;;  %s1248_s25 = sld [smem:[#allocation7 + $0x1a]]  ;;  %s1250_s26 = sld [smem:[#allocation7 + $0x1c]] }
  0x3c   :  { %v206_v31 = vstv %s1507_s16  ;;  %v231_v35 = vstv %s1234_s17  ;;  %s1251_s27 = sld [smem:[#allocation7 + $0x1d]]  ;;  %s1253_s28 = sld [smem:[#allocation7 + $0x1f]] }
  0x3d   :  { %v245_v38 = vstv %s1235_s18  ;;  %v265_v41 = vstv %s1237_s19  ;;  %s1254_s29 = sld [smem:[#allocation7 + $0x20]]  ;;  %s1256_s30 = sld [smem:[#allocation7 + $0x22]] }
  0x3e   :  { %v279_v44 = vstv %s1238_s20  ;;  %v299_v47 = vstv %s1240_s21  ;;  %s1257_s4 = sld [smem:[#allocation7 + $0x23]]  ;;  %s1260_s5 = sld [smem:[#allocation7 + $0x25]] }
  0x3f   :  { %v313_v50 = vstv %s1241_s22  ;;  %v333_v53 = vstv %s1243_s23  ;;  %s1261_s6 = sld [smem:[#allocation7 + $0x26]]  ;;  %s1263_s0 = sld [smem:[#allocation7 + $0x28]] }
  0x40   :  { %v347_v56 = vstv %s1244_s24  ;;  %v371_v59 = vstv %s1247_s1  ;;  %s1597_s7 = sld [smem:[#allocation7 + $0x29]]  ;;  %s1603_s2 = sld [smem:[#allocation7 + $0x2b]] }
  0x41   :  { %v385_v62 = vstv %s1248_s25  ;;  %v405_v1 = vstv %s1250_s26  ;;  %s1609_s8 = sld [smem:[#allocation7]]  ;;  %s1612_s9 = sld [smem:[#allocation7 + $0x2c]] }
  0x42   :  { %s1618_s10 = sld [smem:[#allocation8]]  ;;  %s1621_s11 = sld [smem:[#allocation7 + $0x2e]] }
  0x43   :  { %s1628_s14 = sld [smem:[#allocation7 + $0x3]]  ;;  %s1631_s15 = sld [smem:[#allocation7 + $0x2f]] }
  0x44   :  { %s1640_s16 = sld [smem:[#allocation7 + $0x31]]  ;;  %s1644_s17 = sld [smem:[#allocation7 + $0x6]] }
  0x45   :  { %s1649_s18 = sld [smem:[#allocation7 + $0x32]]  ;;  %s1659_s19 = sld [smem:[#allocation7 + $0x34]] }
  0x46   :  { %s1664_s20 = sld [smem:[#allocation7 + $0x9]]  ;;  %s1669_s21 = sld [smem:[#allocation7 + $0x35]] }
  0x47   :  { %s1678_s22 = sld [smem:[#allocation7 + $0x37]]  ;;  %s1683_s23 = sld [smem:[#allocation7 + $0xc]] }
  0x48   :  { %s1688_s24 = sld [smem:[#allocation7 + $0x38]]  ;;  %s1694_s1 = sld [smem:[#allocation8 + $0x1]] }
  0x49   :  { %s1699_s25 = sld [smem:[#allocation7 + $0x3a]]  ;;  %s1704_s26 = sld [smem:[#allocation7 + $0xf]] }
  0xa2   :  { %v65_v3 = vpop.permute.xlu0 %64 }
  0xa3   :  { %71 = vst.msk [vmem:[#allocation2] sm:$0xf] %vm70_vm2, %v65_v3 }
  0xa6   :  { %v67_v4 = vpop.permute.xlu0 %66 }
  0xa7   :  { %72 = vst.msk [vmem:[#allocation2 + $0x4] sm:$0xf] %vm70_vm2, %v67_v4  ;;  %v419_v4 = vstv %s1251_s27  ;;  %s1709_s27 = sld [smem:[#allocation7 + $0x3b]] }
  0xaa   :  { %v1473_v7 = vld [vmem:[#allocation2] sm:$0x1]  ;;  %v1477_v10 = vld [vmem:[#allocation2 + $0x1] sm:$0x1]  ;;  %v1495_v18 = vld [vmem:[#allocation2 + $0x2] sm:$0x1] }
  0xab   :  { %v105_v8 = vmul.f32 %v104_v5, %v1473_v7  ;;  %v91_v9 = vmul.f32 %v90_v6, %v1473_v7  ;;  %v125_v14 = vmul.f32 %v124_v11, %v1477_v10  ;;  %v139_v16 = vmul.f32 %v138_v15, %v1477_v10  ;;  %v1513_v26 = vld [vmem:[#allocation2 + $0x3] sm:$0x1] }
  0xac   :  { %v159_v21 = vmul.f32 %v158_v20, %v1495_v18  ;;  %v173_v24 = vmul.f32 %v172_v23, %v1495_v18  ;;  %v193_v29 = vmul.f32 %v192_v28, %v1513_v26  ;;  %v207_v32 = vmul.f32 %v206_v31, %v1513_v26 }
  0xad   :  { %109 = vrot.lane.b32.xlu0 %v105_v8, %s1426_s12  ;;  %95 = vrot.lane.b32.xlu1 %v91_v9, %s1427_s13  ;;  %v232_v36 = vmul.f32 %v231_v35, %v1473_v7  ;;  %v246_v39 = vmul.f32 %v245_v38, %v1473_v7  ;;  %v266_v42 = vmul.f32 %v265_v41, %v1477_v10  ;;  %v439_v8 = vstv %s1253_s28  ;;  %s1720_s28 = sld [smem:[#allocation7 + $0x3d]] }
  0xae   :  { %v1484_v12 = vld [vmem:[#allocation2 + $0x4] sm:$0x1]  ;;  %v1497_v19 = vld [vmem:[#allocation2 + $0x5] sm:$0x1]  ;;  %v1515_v27 = vld [vmem:[#allocation2 + $0x6] sm:$0x1]  ;;  %v280_v45 = vmul.f32 %v279_v44, %v1477_v10  ;;  %v300_v48 = vmul.f32 %v299_v47, %v1495_v18  ;;  %v314_v51 = vmul.f32 %v313_v50, %v1495_v18  ;;  %v334_v54 = vmul.f32 %v333_v53, %v1513_v26 }
  0xaf   :  { %v92_v13 = vmul.f32 %v90_v6, %v1484_v12  ;;  %v106_v17 = vmul.f32 %v104_v5, %v1484_v12  ;;  %v126_v22 = vmul.f32 %v124_v11, %v1497_v19  ;;  %v140_v25 = vmul.f32 %v138_v15, %v1497_v19  ;;  %v1527_v34 = vld [vmem:[#allocation2 + $0x7] sm:$0x1] }
  0xb0   :  { %v160_v30 = vmul.f32 %v158_v20, %v1515_v27  ;;  %v174_v33 = vmul.f32 %v172_v23, %v1515_v27  ;;  %v194_v37 = vmul.f32 %v192_v28, %v1527_v34  ;;  %v208_v40 = vmul.f32 %v206_v31, %v1527_v34 }
  0xb1   :  { %129 = vrot.lane.b32.xlu0 %v125_v14, %s1427_s13  ;;  %97 = vrot.lane.b32.xlu1 %v92_v13, %s1427_s13  ;;  %v233_v43 = vmul.f32 %v231_v35, %v1484_v12  ;;  %v247_v46 = vmul.f32 %v245_v38, %v1484_v12  ;;  %v267_v49 = vmul.f32 %v265_v41, %v1497_v19  ;;  %v453_v13 = vstv %s1254_s29  ;;  %s1725_s29 = sld [smem:[#allocation7 + $0x12]] }
  0xb2   :  { %v281_v52 = vmul.f32 %v279_v44, %v1497_v19  ;;  %v301_v55 = vmul.f32 %v299_v47, %v1515_v27  ;;  %v348_v57 = vmul.f32 %v347_v56, %v1513_v26  ;;  %v315_v58 = vmul.f32 %v313_v50, %v1515_v27 }
  0xb3   :  { %v372_v60 = vmul.f32 %v371_v59, %v1473_v7  ;;  %v335_v61 = vmul.f32 %v333_v53, %v1527_v34  ;;  %v386_v63 = vmul.f32 %v385_v62, %v1473_v7  ;;  %v349_v0 = vmul.f32 %v347_v56, %v1527_v34 }
  0xb4   :  { %v406_v2 = vmul.f32 %v405_v1, %v1477_v10  ;;  %v373_v3 = vmul.f32 %v371_v59, %v1484_v12  ;;  %v420_v5 = vmul.f32 %v419_v4, %v1477_v10  ;;  %v387_v6 = vmul.f32 %v385_v62, %v1484_v12 }
  0xb5   :  { %143 = vrot.lane.b32.xlu0 %v139_v16, %s1426_s12  ;;  %111 = vrot.lane.b32.xlu1 %v106_v17, %s1426_s12  ;;  %v440_v9 = vmul.f32 %v439_v8, %v1495_v18  ;;  %v407_v11 = vmul.f32 %v405_v1, %v1497_v19  ;;  %v454_v14 = vmul.f32 %v453_v13, %v1495_v18  ;;  %v473_v16 = vstv %s1256_s30  ;;  %s1730_s30 = sld [smem:[#allocation7 + $0x3e]] }
  0xb6   :  { %v421_v15 = vmul.f32 %v419_v4, %v1497_v19  ;;  %v474_v17 = vmul.f32 %v473_v16, %v1513_v26  ;;  %v441_v20 = vmul.f32 %v439_v8, %v1515_v27  ;;  %v455_v23 = vmul.f32 %v453_v13, %v1515_v27 }
  0xb7   :  { %v475_v28 = vmul.f32 %v473_v16, %v1527_v34  ;;  %v86_v47 = vstv %s1618_s10  ;;  %v665_v13 = vstv %s1649_s18  ;;  %s1785_s10 = sld [smem:[#allocation7 + $0x1b]]  ;;  %s1826_s18 = sld [smem:[#allocation7 + $0x21]] }
  0xb9   :  { %163 = vrot.lane.b32.xlu0 %v159_v21, %s1427_s13  ;;  %131 = vrot.lane.b32.xlu1 %v126_v22, %s1427_s13  ;;  %v487_v21 = vstv %s1257_s4  ;;  %s1740_s4 = sld [smem:[#allocation7 + $0x40]] }
  0xba   :  { %v488_v22 = vmul.f32 %v487_v21, %v1513_v26  ;;  %v489_v31 = vmul.f32 %v487_v21, %v1527_v34 }
  0xbd   :  { %177 = vrot.lane.b32.xlu0 %v173_v24, %s1426_s12  ;;  %145 = vrot.lane.b32.xlu1 %v140_v25, %s1426_s12  ;;  %v511_v24 = vstv %s1260_s5  ;;  %s1745_s5 = sld [smem:[#allocation7 + $0x15]] }
  0xbe   :  { %v512_v25 = vmul.f32 %v511_v24, %v1473_v7  ;;  %v513_v35 = vmul.f32 %v511_v24, %v1484_v12  ;;  %v666_v24 = vmul.f32 %v665_v13, %v1473_v7 }
  0xc1   :  { %197 = vrot.lane.b32.xlu0 %v193_v29, %s1427_s13  ;;  %165 = vrot.lane.b32.xlu1 %v160_v30, %s1427_s13  ;;  %v525_v29 = vstv %s1261_s6  ;;  %s1750_s6 = sld [smem:[#allocation7 + $0x41]] }
  0xc2   :  { %v526_v30 = vmul.f32 %v525_v29, %v1473_v7  ;;  %v527_v38 = vmul.f32 %v525_v29, %v1484_v12  ;;  %v186_v29 = vstv %s1664_s20  ;;  %s1840_s20 = sld [smem:[#allocation7 + $0x43]] }
  0xc5   :  { %211 = vrot.lane.b32.xlu0 %v207_v32, %s1426_s12  ;;  %179 = vrot.lane.b32.xlu1 %v174_v33, %s1426_s12  ;;  %v545_v32 = vstv %s1263_s0  ;;  %s1759_s0 = sld [smem:[#allocation7 + $0x49]] }
  0xc6   :  { %v546_v33 = vmul.f32 %v545_v32, %v1477_v10  ;;  %v547_v41 = vmul.f32 %v545_v32, %v1497_v19 }
  0xc9   :  { %236 = vrot.lane.b32.xlu0 %v232_v36, %s1427_s13  ;;  %199 = vrot.lane.b32.xlu1 %v194_v37, %s1427_s13  ;;  %v559_v36 = vstv %s1597_s7  ;;  %s1764_s7 = sld [smem:[#allocation7 + $0x18]] }
  0xca   :  { %v560_v37 = vmul.f32 %v559_v36, %v1477_v10 }
  0xcd   :  { %250 = vrot.lane.b32.xlu0 %v246_v39, %s1426_s12  ;;  %213 = vrot.lane.b32.xlu1 %v208_v40, %s1426_s12  ;;  %v579_v39 = vstv %s1603_s2  ;;  %s1769_s2 = sld [smem:[#allocation7 + $0x55]] }
  0xce   :  { %v580_v40 = vmul.f32 %v579_v39, %v1495_v18  ;;  %v581_v53 = vmul.f32 %v579_v39, %v1515_v27 }
  0xd1   :  { %270 = vrot.lane.b32.xlu0 %v266_v42, %s1427_s13  ;;  %238 = vrot.lane.b32.xlu1 %v233_v43, %s1427_s13  ;;  %v82_v42 = vstv %s1609_s8  ;;  %v593_v43 = vstv %s1612_s9  ;;  %s1775_s8 = sld [smem:[#allocation8 + $0x2]] }
  0xd2   :  { %v83_v44 = vmul.f32 %v82_v42, %v1473_v7  ;;  %v84_v56 = vmul.f32 %v82_v42, %v1484_v12  ;;  %s1780_s9 = sld [smem:[#allocation7 + $0x4a]] }
  0xd4   :  { %v88_v1 = vadd.f32 %v86_v47, %v84_v56  ;;  %v733_v56 = vstv %s1688_s24  ;;  %s1861_s24 = sld [smem:[#allocation7 + $0x5b]] }
  0xd5   :  { %284 = vrot.lane.b32.xlu0 %v280_v45, %s1426_s12  ;;  %252 = vrot.lane.b32.xlu1 %v247_v46, %s1426_s12  ;;  %v594_v45 = vmul.f32 %v593_v43, %v1495_v18  ;;  %v561_v46 = vmul.f32 %v559_v36, %v1497_v19 }
  0xd9   :  { %304 = vrot.lane.b32.xlu0 %v300_v48, %s1427_s13  ;;  %272 = vrot.lane.b32.xlu1 %v267_v49, %s1427_s13  ;;  %v613_v48 = vstv %s1621_s11  ;;  %v87_v49 = vadd.f32 %v86_v47, %v83_v44  ;;  %v667_v47 = vmul.f32 %v665_v13, %v1484_v12  ;;  %s1790_s11 = sld [smem:[#allocation7 + $0x56]] }
  0xdd   :  { %318 = vrot.lane.b32.xlu0 %v314_v51, %s1426_s12  ;;  %286 = vrot.lane.b32.xlu1 %v281_v52, %s1426_s12  ;;  %v614_v52 = vmul.f32 %v613_v48, %v1513_v26 }
  0xe1   :  { %338 = vrot.lane.b32.xlu0 %v334_v54, %s1427_s13  ;;  %306 = vrot.lane.b32.xlu1 %v301_v55, %s1427_s13  ;;  %v118_v54 = vstv %s1628_s14  ;;  %s1801_s14 = sld [smem:[#allocation7 + $0x4c]] }
  0xe2   :  { %v119_v59 = vmul.f32 %v118_v54, %v1477_v10 }
  0xe5   :  { %352 = vrot.lane.b32.xlu0 %v348_v57, %s1426_s12  ;;  %320 = vrot.lane.b32.xlu1 %v315_v58, %s1426_s12  ;;  %v627_v57 = vstv %s1631_s15  ;;  %s1806_s15 = sld [smem:[#allocation7 + $0x1e]] }
  0xe6   :  { %v628_v62 = vmul.f32 %v627_v57, %v1513_v26 }
  0xe9   :  { %376 = vrot.lane.b32.xlu0 %v372_v60, %s1427_s13  ;;  %340 = vrot.lane.b32.xlu1 %v335_v61, %s1427_s13 }
  0xed   :  { %390 = vrot.lane.b32.xlu0 %v386_v63, %s1426_s12  ;;  %354 = vrot.lane.b32.xlu1 %v349_v0, %s1426_s12  ;;  %v595_v63 = vmul.f32 %v593_v43, %v1515_v27 }
  0xf1   :  { %410 = vrot.lane.b32.xlu0 %v406_v2, %s1427_s13  ;;  %378 = vrot.lane.b32.xlu1 %v373_v3, %s1427_s13  ;;  %v651_v2 = vstv %s1640_s16  ;;  %v152_v3 = vstv %s1644_s17  ;;  %s1811_s16 = sld [smem:[#allocation7 + $0x58]]  ;;  %s1821_s17 = sld [smem:[#allocation7 + $0x4d]] }
  0xf2   :  { %v153_v16 = vmul.f32 %v152_v3, %v1495_v18  ;;  %v653_v36 = vmul.f32 %v651_v2, %v1484_v12 }
  0xf5   :  { %424 = vrot.lane.b32.xlu0 %v420_v5, %s1426_s12  ;;  %392 = vrot.lane.b32.xlu1 %v387_v6, %s1426_s12 }
  0xf9   :  { %444 = vrot.lane.b32.xlu0 %v440_v9, %s1427_s13  ;;  %412 = vrot.lane.b32.xlu1 %v407_v11, %s1427_s13  ;;  %v652_v9 = vmul.f32 %v651_v2, %v1473_v7  ;;  %v615_v11 = vmul.f32 %v613_v48, %v1527_v34  ;;  %v719_v48 = vstv %s1678_s22  ;;  %s1850_s22 = sld [smem:[#allocation7 + $0x4f]] }
  0xfd   :  { %458 = vrot.lane.b32.xlu0 %v454_v14, %s1426_s12  ;;  %426 = vrot.lane.b32.xlu1 %v421_v15, %s1426_s12 }
 0x101   :  { %478 = vrot.lane.b32.xlu0 %v474_v17, %s1427_s13  ;;  %446 = vrot.lane.b32.xlu1 %v441_v20, %s1427_s13  ;;  %v120_v17 = vmul.f32 %v118_v54, %v1497_v19  ;;  %v720_v54 = vmul.f32 %v719_v48, %v1495_v18 }
 0x105   :  { %492 = vrot.lane.b32.xlu0 %v488_v22, %s1426_s12  ;;  %460 = vrot.lane.b32.xlu1 %v455_v23, %s1426_s12 }
 0x109   :  { %516 = vrot.lane.b32.xlu0 %v512_v25, %s1427_s13  ;;  %480 = vrot.lane.b32.xlu1 %v475_v28, %s1427_s13  ;;  %v629_v25 = vmul.f32 %v627_v57, %v1527_v34  ;;  %v685_v28 = vstv %s1659_s19  ;;  %s1831_s19 = sld [smem:[#allocation7 + $0x59]] }
 0x10d   :  { %530 = vrot.lane.b32.xlu0 %v526_v30, %s1426_s12  ;;  %494 = vrot.lane.b32.xlu1 %v489_v31, %s1426_s12 }
 0x111   :  { %550 = vrot.lane.b32.xlu0 %v546_v33, %s1427_s13  ;;  %518 = vrot.lane.b32.xlu1 %v513_v35, %s1427_s13  ;;  %v686_v35 = vmul.f32 %v685_v28, %v1477_v10 }
 0x115   :  { %564 = vrot.lane.b32.xlu0 %v560_v37, %s1426_s12  ;;  %532 = vrot.lane.b32.xlu1 %v527_v38, %s1426_s12  ;;  %v699_v37 = vstv %s1669_s21  ;;  %s1845_s21 = sld [smem:[#allocation7 + $0x24]] }
 0x116   :  { %v701_v2 = vmul.f32 %v699_v37, %v1497_v19 }
 0x119   :  { %584 = vrot.lane.b32.xlu0 %v580_v40, %s1427_s13  ;;  %552 = vrot.lane.b32.xlu1 %v547_v41, %s1427_s13  ;;  %v187_v40 = vmul.f32 %v186_v29, %v1513_v26  ;;  %v154_v41 = vmul.f32 %v152_v3, %v1515_v27 }
 0x11d   :  { %598 = vrot.lane.b32.xlu0 %v594_v45, %s1426_s12  ;;  %566 = vrot.lane.b32.xlu1 %v561_v46, %s1426_s12  ;;  %v700_v46 = vmul.f32 %v699_v37, %v1477_v10 }
 0x11f   :  { %v110_v50 = vpop.permute.xlu0 %109  ;;  %v96_v51 = vpop.permute.xlu1 %95 }
 0x120   :  { %v101_v55 = vadd.f32 %v96_v51, %v87_v49  ;;  %v223_v49 = vstv %s1683_s23  ;;  %s1856_s23 = sld [smem:[#allocation8 + $0x3]] }
 0x121   :  { %618 = vrot.lane.b32.xlu0 %v614_v52, %s1427_s13  ;;  %586 = vrot.lane.b32.xlu1 %v581_v53, %s1427_s13 }
 0x122   :  { %v115_v58 = vadd.f32 %v110_v50, %v101_v55  ;;  %v687_v55 = vmul.f32 %v685_v28, %v1497_v19  ;;  %v735_v28 = vmul.f32 %v733_v56, %v1515_v27 }
 0x123   :  { %v130_v60 = vpop.permute.xlu0 %129  ;;  %v98_v61 = vpop.permute.xlu1 %97 }
 0x124   :  { %v121_v0 = vadd.f32 %v119_v59, %v115_v58  ;;  %v102_v5 = vadd.f32 %v98_v61, %v88_v1  ;;  %v224_v59 = vmul.f32 %v223_v49, %v1473_v7  ;;  %v227_v61 = vstv %s1694_s1  ;;  %s1866_s1 = sld [smem:[#allocation7 + $0x27]] }
 0x125   :  { %632 = vrot.lane.b32.xlu0 %v628_v62, %s1426_s12  ;;  %600 = vrot.lane.b32.xlu1 %v595_v63, %s1426_s12  ;;  %v734_v1 = vmul.f32 %v733_v56, %v1495_v18 }
 0x126   :  { %v135_v4 = vadd.f32 %v130_v60, %v121_v0  ;;  %v188_v60 = vmul.f32 %v186_v29, %v1527_v34  ;;  %v228_v3 = vadd.f32 %v227_v61, %v224_v59 }
 0x127   :  { %v144_v6 = vpop.permute.xlu0 %143  ;;  %v112_v8 = vpop.permute.xlu1 %111 }
 0x128   :  { %v149_v14 = vadd.f32 %v144_v6, %v135_v4  ;;  %v116_v15 = vadd.f32 %v112_v8, %v102_v5  ;;  %v753_v4 = vstv %s1699_s25  ;;  %v259_v5 = vstv %s1704_s26  ;;  %s1871_s25 = sld [smem:[#allocation7 + $0x44]]  ;;  %s1882_s26 = sld [smem:[#allocation7 + $0x50]] }
 0x129   :  { %656 = vrot.lane.b32.xlu0 %v652_v9, %s1427_s13  ;;  %620 = vrot.lane.b32.xlu1 %v615_v11, %s1427_s13  ;;  %v754_v13 = vmul.f32 %v753_v4, %v1513_v26 }
 0x12a   :  { %v155_v20 = vadd.f32 %v153_v16, %v149_v14  ;;  %v122_v21 = vadd.f32 %v120_v17, %v116_v15  ;;  %v721_v14 = vmul.f32 %v719_v48, %v1515_v27  ;;  %v767_v15 = vstv %s1709_s27  ;;  %s1887_s27 = sld [smem:[#allocation7 + $0x2a]] }
 0x12b   :  { %v164_v22 = vpop.permute.xlu0 %163  ;;  %v132_v23 = vpop.permute.xlu1 %131 }
 0x12c   :  { %v169_v30 = vadd.f32 %v164_v22, %v155_v20  ;;  %v136_v31 = vadd.f32 %v132_v23, %v122_v21  ;;  %v260_v20 = vmul.f32 %v259_v5, %v1477_v10  ;;  %v225_v21 = vmul.f32 %v223_v49, %v1484_v12 }
 0x12d   :  { %670 = vrot.lane.b32.xlu0 %v666_v24, %s1426_s12  ;;  %634 = vrot.lane.b32.xlu1 %v629_v25, %s1426_s12  ;;  %v768_v25 = vmul.f32 %v767_v15, %v1513_v26  ;;  %v769_v49 = vmul.f32 %v767_v15, %v1527_v34 }
 0x12e   :  { %v229_v29 = vadd.f32 %v227_v61, %v225_v21 }
 0x12f   :  { %v178_v32 = vpop.permute.xlu0 %177  ;;  %v146_v33 = vpop.permute.xlu1 %145 }
 0x130   :  { %v183_v38 = vadd.f32 %v178_v32, %v169_v30  ;;  %v150_v39 = vadd.f32 %v146_v33, %v136_v31  ;;  %v791_v30 = vstv %s1720_s28  ;;  %v293_v31 = vstv %s1725_s29  ;;  %s1892_s28 = sld [smem:[#allocation7 + $0x5c]]  ;;  %s1908_s29 = sld [smem:[#allocation7 + $0x46]] }
 0x131   :  { %690 = vrot.lane.b32.xlu0 %v686_v35, %s1427_s13  ;;  %658 = vrot.lane.b32.xlu1 %v653_v36, %s1427_s13  ;;  %v792_v37 = vmul.f32 %v791_v30, %v1473_v7 }
 0x132   :  { %v189_v42 = vadd.f32 %v187_v40, %v183_v38  ;;  %v156_v43 = vadd.f32 %v154_v41, %v150_v39  ;;  %v755_v38 = vmul.f32 %v753_v4, %v1527_v34  ;;  %v805_v39 = vstv %s1730_s30  ;;  %s1913_s30 = sld [smem:[#allocation7 + $0x2d]] }
 0x133   :  { %v198_v44 = vpop.permute.xlu0 %197  ;;  %v166_v45 = vpop.permute.xlu1 %165  ;;  %v806_v48 = vmul.f32 %v805_v39, %v1473_v7  ;;  %v807_v4 = vmul.f32 %v805_v39, %v1484_v12 }
 0x134   :  { %v203_v50 = vadd.f32 %v198_v44, %v189_v42  ;;  %v170_v51 = vadd.f32 %v166_v45, %v156_v43  ;;  %v294_v42 = vmul.f32 %v293_v31, %v1495_v18  ;;  %v261_v43 = vmul.f32 %v259_v5, %v1497_v19 }
 0x135   :  { %704 = vrot.lane.b32.xlu0 %v700_v46, %s1426_s12  ;;  %672 = vrot.lane.b32.xlu1 %v667_v47, %s1426_s12  ;;  %v931_v5 = vstv %s1759_s0  ;;  %s1943_s0 = sld [smem:[#allocation7 + $0x47]] }
 0x137   :  { %v212_v52 = vpop.permute.xlu0 %211  ;;  %v180_v53 = vpop.permute.xlu1 %179 }
 0x138   :  { %v217_v57 = vadd.f32 %v212_v52, %v203_v50  ;;  %v184_v58 = vadd.f32 %v180_v53, %v170_v51  ;;  %v825_v50 = vstv %s1740_s4  ;;  %v327_v51 = vstv %s1745_s5  ;;  %s1920_s4 = sld [smem:[#allocation7 + $0x52]]  ;;  %s1931_s5 = sld [smem:[#allocation7 + $0x5e]] }
 0x139   :  { %724 = vrot.lane.b32.xlu0 %v720_v54, %s1427_s13  ;;  %692 = vrot.lane.b32.xlu1 %v687_v55, %s1427_s13  ;;  %v826_v56 = vmul.f32 %v825_v50, %v1477_v10  ;;  %v328_v61 = vmul.f32 %v327_v51, %v1513_v26  ;;  %v827_v15 = vmul.f32 %v825_v50, %v1497_v19 }
 0x13a   :  { %220 = vst.msk [vmem:[#allocation10] sm:$0x1] %vm219_vm3, %v217_v57  ;;  %v190_v62 = vadd.f32 %v188_v60, %v184_v58  ;;  %v793_v57 = vmul.f32 %v791_v30, %v1484_v12  ;;  %v839_v58 = vstv %s1750_s6  ;;  %s1936_s6 = sld [smem:[#allocation7 + $0x30]] }
 0x13b   :  { %v237_v63 = vpop.permute.xlu0 %236  ;;  %v200_v0 = vpop.permute.xlu1 %199  ;;  %v841_v30 = vmul.f32 %v839_v58, %v1497_v19 }
 0x13c   :  { %v242_v6 = vadd.f32 %v237_v63, %v228_v3  ;;  %v204_v8 = vadd.f32 %v200_v0, %v190_v62  ;;  %v295_v62 = vmul.f32 %v293_v31, %v1515_v27  ;;  %v840_v3 = vmul.f32 %v839_v58, %v1477_v10 }
 0x13d   :  { %738 = vrot.lane.b32.xlu0 %v734_v1, %s1426_s12  ;;  %706 = vrot.lane.b32.xlu1 %v701_v2, %s1426_s12 }
 0x13f   :  { %v251_v9 = vpop.permute.xlu0 %250  ;;  %v214_v11 = vpop.permute.xlu1 %213 }
 0x140   :  { %v256_v16 = vadd.f32 %v251_v9, %v242_v6  ;;  %v218_v17 = vadd.f32 %v214_v11, %v204_v8  ;;  %v363_v6 = vstv %s1764_s7  ;;  %s1949_s7 = sld [smem:[#allocation8 + $0x4]] }
 0x141   :  { %758 = vrot.lane.b32.xlu0 %v754_v13, %s1427_s13  ;;  %726 = vrot.lane.b32.xlu1 %v721_v14, %s1427_s13  ;;  %v932_v14 = vmul.f32 %v931_v5, %v1473_v7  ;;  %v364_v21 = vmul.f32 %v363_v6, %v1473_v7 }
 0x142   :  { %221 = vst.msk [vmem:[#allocation10 + $0x8] sm:$0x1] %vm219_vm3, %v218_v17  ;;  %v262_v22 = vadd.f32 %v260_v20, %v256_v16  ;;  %v1071_v16 = vstv %s1769_s2  ;;  %s1954_s2 = sld [smem:[#allocation7 + $0x53]] }
 0x143   :  { %v271_v23 = vpop.permute.xlu0 %270  ;;  %v239_v24 = vpop.permute.xlu1 %238  ;;  %v1073_v50 = vmul.f32 %v1071_v16, %v1484_v12 }
 0x144   :  { %v276_v32 = vadd.f32 %v271_v23, %v262_v22  ;;  %v243_v33 = vadd.f32 %v239_v24, %v229_v29  ;;  %v329_v22 = vmul.f32 %v327_v51, %v1527_v34  ;;  %v367_v23 = vstv %s1775_s8  ;;  %s1959_s8 = sld [smem:[#allocation7 + $0x33]] }
 0x145   :  { %772 = vrot.lane.b32.xlu0 %v768_v25, %s1426_s12  ;;  %740 = vrot.lane.b32.xlu1 %v735_v28, %s1426_s12  ;;  %v1072_v29 = vmul.f32 %v1071_v16, %v1473_v7  ;;  %v368_v31 = vadd.f32 %v367_v23, %v364_v21 }
 0x147   :  { %v285_v35 = vpop.permute.xlu0 %284  ;;  %v253_v36 = vpop.permute.xlu1 %252 }
 0x148   :  { %v290_v40 = vadd.f32 %v285_v35, %v276_v32  ;;  %v257_v41 = vadd.f32 %v253_v36, %v243_v33  ;;  %v945_v32 = vstv %s1780_s9  ;;  %v399_v33 = vstv %s1785_s10  ;;  %s1966_s9 = sld [smem:[#allocation7 + $0x5f]]  ;;  %s1982_s10 = sld [smem:[#allocation7 + $0x36]] }
 0x149   :  { %796 = vrot.lane.b32.xlu0 %v792_v37, %s1427_s13  ;;  %760 = vrot.lane.b32.xlu1 %v755_v38, %s1427_s13  ;;  %v946_v39 = vmul.f32 %v945_v32, %v1473_v7 }
 0x14a   :  { %v296_v44 = vadd.f32 %v294_v42, %v290_v40  ;;  %v263_v45 = vadd.f32 %v261_v43, %v257_v41  ;;  %v933_v40 = vmul.f32 %v931_v5, %v1484_v12  ;;  %v1085_v41 = vstv %s1790_s11  ;;  %s1997_s11 = sld [smem:[#allocation7 + $0x39]] }
 0x14b   :  { %v305_v46 = vpop.permute.xlu0 %304  ;;  %v273_v47 = vpop.permute.xlu1 %272 }
 0x14c   :  { %v310_v52 = vadd.f32 %v305_v46, %v296_v44  ;;  %v277_v53 = vadd.f32 %v273_v47, %v263_v45  ;;  %v400_v44 = vmul.f32 %v399_v33, %v1477_v10  ;;  %v365_v45 = vmul.f32 %v363_v6, %v1484_v12 }
 0x14d   :  { %810 = vrot.lane.b32.xlu0 %v806_v48, %s1426_s12  ;;  %774 = vrot.lane.b32.xlu1 %v769_v49, %s1426_s12  ;;  %v1086_v49 = vmul.f32 %v1085_v41, %v1473_v7  ;;  %v1087_v6 = vmul.f32 %v1085_v41, %v1484_v12 }
 0x14e   :  { %v369_v51 = vadd.f32 %v367_v23, %v365_v45 }
 0x14f   :  { %v319_v54 = vpop.permute.xlu0 %318  ;;  %v287_v55 = vpop.permute.xlu1 %286 }
 0x150   :  { %v324_v59 = vadd.f32 %v319_v54, %v310_v52  ;;  %v291_v60 = vadd.f32 %v287_v55, %v277_v53  ;;  %v965_v52 = vstv %s1801_s14  ;;  %v433_v53 = vstv %s1806_s15  ;;  %s2008_s14 = sld [smem:[#allocation8 + $0x5]]  ;;  %s2020_s15 = sld [smem:[#allocation7 + $0x42]] }
 0x151   :  { %830 = vrot.lane.b32.xlu0 %v826_v56, %s1427_s13  ;;  %798 = vrot.lane.b32.xlu1 %v793_v57, %s1427_s13  ;;  %v966_v58 = vmul.f32 %v965_v52, %v1477_v10  ;;  %v435_v23 = vmul.f32 %v433_v53, %v1515_v27 }
 0x152   :  { %v330_v63 = vadd.f32 %v328_v61, %v324_v59  ;;  %v297_v0 = vadd.f32 %v295_v62, %v291_v60  ;;  %v947_v59 = vmul.f32 %v945_v32, %v1484_v12  ;;  %v1105_v60 = vstv %s1811_s16  ;;  %s2024_s16 = sld [smem:[#allocation7 + $0x48]] }
 0x153   :  { %v339_v1 = vpop.permute.xlu0 %338  ;;  %v307_v2 = vpop.permute.xlu1 %306  ;;  %v1106_v5 = vmul.f32 %v1105_v60, %v1477_v10  ;;  %v1119_v12 = vstv %s1831_s19  ;;  %v859_v32 = vstv %s1840_s20  ;;  %s2035_s19 = sld [smem:[#allocation8 + $0x7]]  ;;  %s2037_s20 = sld [smem:[#allocation7 + $0x4b]] }
 0x154   :  { %v344_v8 = vadd.f32 %v339_v1, %v330_v63  ;;  %v311_v9 = vadd.f32 %v307_v2, %v297_v0  ;;  %v434_v63 = vmul.f32 %v433_v53, %v1495_v18  ;;  %v401_v0 = vmul.f32 %v399_v33, %v1497_v19 }
 0x155   :  { %844 = vrot.lane.b32.xlu0 %v840_v3, %s1426_s12  ;;  %812 = vrot.lane.b32.xlu1 %v807_v4, %s1426_s12 }
 0x157   :  { %v353_v11 = vpop.permute.xlu0 %352  ;;  %v321_v13 = vpop.permute.xlu1 %320 }
 0x158   :  { %v358_v17 = vadd.f32 %v353_v11, %v344_v8  ;;  %v325_v20 = vadd.f32 %v321_v13, %v311_v9  ;;  %v979_v8 = vstv %s1821_s17  ;;  %v467_v9 = vstv %s1826_s18  ;;  %s2027_s17 = sld [smem:[#allocation8 + $0x6]]  ;;  %s2029_s18 = sld [smem:[#allocation7 + $0x54]] }
 0x159   :  { %936 = vrot.lane.b32.xlu0 %v932_v14, %s1427_s13  ;;  %832 = vrot.lane.b32.xlu1 %v827_v15, %s1427_s13  ;;  %v980_v16 = vmul.f32 %v979_v8, %v1477_v10 }
 0x15a   :  { %360 = vst.msk [vmem:[#allocation10 + $0x1] sm:$0x1] %vm219_vm3, %v358_v17  ;;  %v331_v24 = vadd.f32 %v329_v22, %v325_v20  ;;  %v967_v17 = vmul.f32 %v965_v52, %v1497_v19  ;;  %v468_v22 = vmul.f32 %v467_v9, %v1513_v26  ;;  %v503_v26 = vstv %s1845_s21  ;;  %s2044_s21 = sld [smem:[#allocation7 + $0x57]] }
 0x15b   :  { %v377_v25 = vpop.permute.xlu0 %376  ;;  %v341_v28 = vpop.permute.xlu1 %340 }
 0x15c   :  { %v382_v35 = vadd.f32 %v377_v25, %v368_v31  ;;  %v345_v36 = vadd.f32 %v341_v28, %v331_v24  ;;  %v1107_v31 = vmul.f32 %v1105_v60, %v1497_v19 }
 0x15d   :  { %1076 = vrot.lane.b32.xlu0 %v1072_v29, %s1427_s13  ;;  %846 = vrot.lane.b32.xlu1 %v841_v30, %s1426_s12  ;;  %v1120_v30 = vmul.f32 %v1119_v12, %v1477_v10  ;;  %v981_v10 = vmul.f32 %v979_v8, %v1497_v19 }
 0x15f   :  { %v391_v37 = vpop.permute.xlu0 %390  ;;  %v355_v38 = vpop.permute.xlu1 %354 }
 0x160   :  { %v396_v42 = vadd.f32 %v391_v37, %v382_v35  ;;  %v359_v43 = vadd.f32 %v355_v38, %v345_v36  ;;  %v860_v38 = vmul.f32 %v859_v32, %v1495_v18 }
 0x161   :  { %950 = vrot.lane.b32.xlu0 %v946_v39, %s1426_s12  ;;  %938 = vrot.lane.b32.xlu1 %v933_v40, %s1427_s13  ;;  %v999_v39 = vstv %s1850_s22  ;;  %s2057_s22 = sld [smem:[#allocation7 + $0x4e]] }
 0x162   :  { %361 = vst.msk [vmem:[#allocation10 + $0x9] sm:$0x1] %vm219_vm3, %v359_v43  ;;  %v402_v46 = vadd.f32 %v400_v44, %v396_v42  ;;  %v504_v42 = vmul.f32 %v503_v26, %v1473_v7  ;;  %v469_v43 = vmul.f32 %v467_v9, %v1527_v34  ;;  %v507_v44 = vstv %s1856_s23  ;;  %s2060_s23 = sld [smem:[#allocation7 + $0x5a]] }
 0x163   :  { %v411_v47 = vpop.permute.xlu0 %410  ;;  %v379_v48 = vpop.permute.xlu1 %378  ;;  %v1139_v7 = vstv %s1861_s24  ;;  %v539_v34 = vstv %s1866_s1  ;;  %s2068_s24 = sld [smem:[#allocation7 + $0x45]]  ;;  %s2071_s1 = sld [smem:[#allocation7 + $0x51]] }
 0x164   :  { %v416_v54 = vadd.f32 %v411_v47, %v402_v46  ;;  %v383_v55 = vadd.f32 %v379_v48, %v369_v51  ;;  %v1000_v48 = vmul.f32 %v999_v39, %v1495_v18 }
 0x165   :  { %1090 = vrot.lane.b32.xlu0 %v1086_v49, %s1426_s12  ;;  %1078 = vrot.lane.b32.xlu1 %v1073_v50, %s1427_s13  ;;  %v1121_v49 = vmul.f32 %v1119_v12, %v1497_v19  ;;  %v508_v50 = vadd.f32 %v507_v44, %v504_v42  ;;  %v873_v19 = vstv %s1871_s25  ;;  %s2074_s25 = sld [smem:[#allocation7 + $0x5d]] }
 0x167   :  { %v425_v56 = vpop.permute.xlu0 %424  ;;  %v393_v57 = vpop.permute.xlu1 %392 }
 0x168   :  { %v430_v61 = vadd.f32 %v425_v56, %v416_v54  ;;  %v397_v62 = vadd.f32 %v393_v57, %v383_v55  ;;  %v1140_v55 = vmul.f32 %v1139_v7, %v1495_v18  ;;  %v861_v56 = vmul.f32 %v859_v32, %v1515_v27 }
 0x169   :  { %970 = vrot.lane.b32.xlu0 %v966_v58, %s1427_s13  ;;  %952 = vrot.lane.b32.xlu1 %v947_v59, %s1426_s12  ;;  %v1894_v59 = vld [vmem:[#allocation2 + $0x1] sm:$0x1]  ;;  %v607_v32 = vstv %s1913_s30 }
 0x16a   :  { %v436_v1 = vadd.f32 %v434_v63, %v430_v61  ;;  %v403_v2 = vadd.f32 %v401_v0, %v397_v62  ;;  %v540_v60 = vmul.f32 %v1894_v59, %v539_v34  ;;  %v1897_v61 = vld [vmem:[#allocation2 + $0x4] sm:$0x1] }
 0x16b   :  { %v445_v3 = vpop.permute.xlu0 %444  ;;  %v413_v4 = vpop.permute.xlu1 %412  ;;  %v505_v62 = vmul.f32 %v1897_v61, %v503_v26 }
 0x16c   :  { %v450_v11 = vadd.f32 %v445_v3, %v436_v1  ;;  %v417_v13 = vadd.f32 %v413_v4, %v403_v2  ;;  %v1903_v1 = vld [vmem:[#allocation2 + $0x2] sm:$0x1]  ;;  %v1001_v3 = vmul.f32 %v999_v39, %v1515_v27  ;;  %v1033_v39 = vstv %s1920_s4 }
 0x16d   :  { %1110 = vrot.lane.b32.xlu0 %v1106_v5, %s1427_s13  ;;  %1092 = vrot.lane.b32.xlu1 %v1087_v6, %s1426_s12  ;;  %v874_v2 = vmul.f32 %v1903_v1, %v873_v19  ;;  %v509_v4 = vadd.f32 %v507_v44, %v505_v62  ;;  %v1013_v5 = vstv %s1882_s26  ;;  %v573_v6 = vstv %s1887_s27  ;;  %s1428_s26 = smov [#allocation10]  }
 0x16e   :  { %s1207_s27 = sshll.u32 %s1428_s26, 4  ;;  %s1208_s27 = int_to_ptr.vmem [resolvable:$true] %s1207_s27 }
 0x16f   :  { %v459_v14 = vpop.permute.xlu0 %458  ;;  %v427_v15 = vpop.permute.xlu1 %426  ;;  %p1394_p5 = scmp.lt.s32.totalorder %s1208_s27, %s1208_s27 }
 0x170   :  { %v464_v20 = vadd.f32 %v459_v14, %v450_v11  ;;  %v431_v21 = vadd.f32 %v427_v15, %v417_v13  ;;  %v1014_v14 = vmul.f32 %v1903_v1, %v1013_v5  ;;  %v1916_v15 = vld [vmem:[#allocation2 + $0x6] sm:$0x1] }
 0x171   :  { %984 = vrot.lane.b32.xlu0 %v980_v16, %s1426_s12  ;;  %972 = vrot.lane.b32.xlu1 %v967_v17, %s1427_s13  ;;  %v1141_v27 = vmul.f32 %v1916_v15, %v1139_v7  ;;  %v1153_v16 = vstv %s1892_s28  ;;  %v643_v7 = vstv %s1936_s6  ;;  %s1389_s28 = scalar_lea.vmem %s1208_s27, 256 }
 0x172   :  { %v470_v24 = vadd.f32 %v468_v22, %v464_v20  ;;  %v437_v25 = vadd.f32 %v435_v23, %v431_v21  ;;  %v574_v20 = vmul.f32 %v1903_v1, %v573_v6  ;;  %v1923_v21 = vld [vmem:[#allocation2 + $0x5] sm:$0x1]  ;;  %p1390_p4 = scmp.ne.s32.totalorder %s1208_s27, %s1389_s28  ;;  %p1395_p6 = scmp.lt.s32.totalorder %s1389_s28, %s1389_s28 }
 0x173   :  { %v479_v28 = vpop.permute.xlu0 %478  ;;  %v447_v29 = vpop.permute.xlu1 %446  ;;  %v541_v22 = vmul.f32 %v1923_v21, %v539_v34 }
 0x174   :  { %v484_v33 = vadd.f32 %v479_v28, %v470_v24  ;;  %v451_v35 = vadd.f32 %v447_v29, %v437_v25  ;;  %v1154_v29 = vmul.f32 %v1903_v1, %v1153_v16  ;;  %p1396_p7 = por %p1395_p6, %p1394_p5 }
 0x175   :  { %1124 = vrot.lane.b32.xlu0 %v1120_v30, %s1426_s12  ;;  %1112 = vrot.lane.b32.xlu1 %v1107_v31, %s1427_s13  ;;  %v875_v30 = vmul.f32 %v1916_v15, %v873_v19  ;;  %v893_v31 = vstv %s1908_s29  ;;  %v907_v19 = vstv %s1943_s0 }
 0x176   :  { %p1397_p8 = pnand %p1396_p7, %p1390_p4 }
 0x177   :  { %v493_v36 = vpop.permute.xlu0 %492  ;;  %v461_v37 = vpop.permute.xlu1 %460 }
 0x178   :  { %v498_v40 = vadd.f32 %v493_v36, %v484_v33  ;;  %v465_v41 = vadd.f32 %v461_v37, %v451_v35  ;;  %v1938_v37 = vld [vmem:[#allocation2 + $0x3] sm:$0x1] }
 0x179   :  { %864 = vrot.lane.b32.xlu0 %v860_v38, %s1427_s13  ;;  %986 = vrot.lane.b32.xlu1 %v981_v10, %s1426_s12  ;;  %v894_v38 = vmul.f32 %v1938_v37, %v893_v31  ;;  %v1015_v10 = vmul.f32 %v1916_v15, %v1013_v5  ;;  %v608_v42 = vmul.f32 %v1938_v37, %v607_v32 }
 0x17a   :  { %500 = vst.msk [vmem:[#allocation10 + $0x2] sm:$0x1] %vm219_vm3, %v498_v40  ;;  %v471_v45 = vadd.f32 %v469_v43, %v465_v41  ;;  %v575_v43 = vmul.f32 %v1916_v15, %v573_v6 }
 0x17b   :  { %v517_v46 = vpop.permute.xlu0 %516  ;;  %v481_v47 = vpop.permute.xlu1 %480 }
 0x17c   :  { %v522_v51 = vadd.f32 %v517_v46, %v508_v50  ;;  %v485_v52 = vadd.f32 %v481_v47, %v471_v45  ;;  %v1173_v50 = vstv %s1931_s5 }
 0x17d   :  { %1004 = vrot.lane.b32.xlu0 %v1000_v48, %s1427_s13  ;;  %1126 = vrot.lane.b32.xlu1 %v1121_v49, %s1426_s12  ;;  %v1034_v48 = vmul.f32 %v1938_v37, %v1033_v39  ;;  %v1155_v49 = vmul.f32 %v1916_v15, %v1153_v16 }
 0x17f   :  { %v531_v53 = vpop.permute.xlu0 %530  ;;  %v495_v54 = vpop.permute.xlu1 %494 }
 0x180   :  { %v536_v57 = vadd.f32 %v531_v53, %v522_v51  ;;  %v499_v58 = vadd.f32 %v495_v54, %v485_v52  ;;  %v1174_v54 = vmul.f32 %v1938_v37, %v1173_v50 }
 0x181   :  { %1144 = vrot.lane.b32.xlu0 %v1140_v55, %s1427_s13  ;;  %866 = vrot.lane.b32.xlu1 %v861_v56, %s1427_s13  ;;  %v1962_v55 = vld [vmem:[#allocation2 + $0x7] sm:$0x1] }
 0x182   :  { %501 = vst.msk [vmem:[#allocation10 + $0xa] sm:$0x1] %vm219_vm3, %v499_v58  ;;  %v542_v18 = vadd.f32 %v540_v60, %v536_v57  ;;  %v895_v56 = vmul.f32 %v1962_v55, %v893_v31  ;;  %v1968_v60 = vld [vmem:[#allocation2] sm:$0x1]  ;;  %v1035_v5 = vmul.f32 %v1962_v55, %v1033_v39  ;;  %v909_v31 = vmul.f32 %v1962_v55, %v907_v19 }
 0x183   :  { %v551_v63 = vpop.permute.xlu0 %550  ;;  %v519_v0 = vpop.permute.xlu1 %518  ;;  %v644_v62 = vmul.f32 %v1968_v60, %v643_v7 }
 0x184   :  { %v556_v8 = vadd.f32 %v551_v63, %v542_v18  ;;  %v523_v9 = vadd.f32 %v519_v0, %v509_v4  ;;  %v609_v18 = vmul.f32 %v1962_v55, %v607_v32  ;;  %v647_v63 = vstv %s1949_s7 }
 0x185   :  { %878 = vrot.lane.b32.xlu0 %v874_v2, %s1426_s12  ;;  %1006 = vrot.lane.b32.xlu1 %v1001_v3, %s1427_s13  ;;  %v908_v4 = vmul.f32 %v1938_v37, %v907_v19  ;;  %v648_v6 = vadd.f32 %v647_v63, %v644_v62 }
 0x187   :  { %v565_v11 = vpop.permute.xlu0 %564  ;;  %v533_v13 = vpop.permute.xlu1 %532 }
 0x188   :  { %v570_v17 = vadd.f32 %v565_v11, %v556_v8  ;;  %v537_v12 = vadd.f32 %v533_v13, %v523_v9  ;;  %v1047_v8 = vstv %s1954_s2  ;;  %v679_v9 = vstv %s1959_s8 }
 0x189   :  { %1018 = vrot.lane.b32.xlu0 %v1014_v14, %s1426_s12  ;;  %1146 = vrot.lane.b32.xlu1 %v1141_v27, %s1427_s13  ;;  %v1048_v16 = vmul.f32 %v1938_v37, %v1047_v8 }
 0x18a   :  { %v576_v23 = vadd.f32 %v574_v20, %v570_v17  ;;  %v543_v24 = vadd.f32 %v541_v22, %v537_v12  ;;  %v1175_v17 = vmul.f32 %v1962_v55, %v1173_v50  ;;  %v1187_v12 = vstv %s1966_s9 }
 0x18b   :  { %v585_v25 = vpop.permute.xlu0 %584  ;;  %v553_v28 = vpop.permute.xlu1 %552 }
 0x18c   :  { %v590_v26 = vadd.f32 %v585_v25, %v576_v23  ;;  %v557_v33 = vadd.f32 %v553_v28, %v543_v24  ;;  %v680_v23 = vmul.f32 %v1894_v59, %v679_v9  ;;  %v645_v24 = vmul.f32 %v1897_v61, %v643_v7 }
 0x18d   :  { %1158 = vrot.lane.b32.xlu0 %v1154_v29, %s1426_s12  ;;  %880 = vrot.lane.b32.xlu1 %v875_v30, %s1426_s12  ;;  %v1188_v30 = vmul.f32 %v1938_v37, %v1187_v12 }
 0x18e   :  { %v649_v32 = vadd.f32 %v647_v63, %v645_v24 }
 0x18f   :  { %v599_v35 = vpop.permute.xlu0 %598  ;;  %v567_v36 = vpop.permute.xlu1 %566 }
 0x190   :  { %v604_v40 = vadd.f32 %v599_v35, %v590_v26  ;;  %v571_v41 = vadd.f32 %v567_v36, %v557_v33  ;;  %v713_v26 = vstv %s1982_s10 }
 0x191   :  { %898 = vrot.lane.b32.xlu0 %v894_v38, %s1427_s13  ;;  %1020 = vrot.lane.b32.xlu1 %v1015_v10, %s1426_s12  ;;  %v1049_v10 = vmul.f32 %v1962_v55, %v1047_v8 }
 0x192   :  { %v610_v44 = vadd.f32 %v608_v42, %v604_v40  ;;  %v577_v45 = vadd.f32 %v575_v43, %v571_v41  ;;  %v714_v41 = vmul.f32 %v1903_v1, %v713_v26  ;;  %v681_v42 = vmul.f32 %v1923_v21, %v679_v9 }
 0x193   :  { %v619_v46 = vpop.permute.xlu0 %618  ;;  %v587_v47 = vpop.permute.xlu1 %586 }
 0x194   :  { %v624_v34 = vadd.f32 %v619_v46, %v610_v44  ;;  %v591_v51 = vadd.f32 %v587_v47, %v577_v45  ;;  %v1189_v47 = vmul.f32 %v1962_v55, %v1187_v12 }
 0x195   :  { %1038 = vrot.lane.b32.xlu0 %v1034_v48, %s1427_s13  ;;  %1160 = vrot.lane.b32.xlu1 %v1155_v49, %s1426_s12  ;;  %v747_v48 = vstv %s1997_s11 }
 0x196   :  { %v749_v8 = vmul.f32 %v1962_v55, %v747_v48 }
 0x197   :  { %v633_v52 = vpop.permute.xlu0 %632  ;;  %v601_v53 = vpop.permute.xlu1 %600 }
 0x198   :  { %v638_v57 = vadd.f32 %v633_v52, %v624_v34  ;;  %v605_v58 = vadd.f32 %v601_v53, %v591_v51  ;;  %v748_v53 = vmul.f32 %v1938_v37, %v747_v48  ;;  %v1063_v48 = vstv %s2029_s18 }
 0x199   :  { %1178 = vrot.lane.b32.xlu0 %v1174_v54, %s1427_s13  ;;  %900 = vrot.lane.b32.xlu1 %v895_v56, %s1427_s13  ;;  %v715_v54 = vmul.f32 %v1916_v15, %v713_v26  ;;  %v853_v26 = vstv %s2020_s15 }
 0x19a   :  { %640 = vst.msk [vmem:[#allocation10 + $0x3] sm:$0x1] %vm219_vm3, %v638_v57  ;;  %v611_v0 = vadd.f32 %v609_v18, %v605_v58 }
 0x19b   :  { %v657_v2 = vpop.permute.xlu0 %656  ;;  %v621_v3 = vpop.permute.xlu1 %620 }
 0x19c   :  { %v662_v11 = vadd.f32 %v657_v2, %v648_v6  ;;  %v625_v13 = vadd.f32 %v621_v3, %v611_v0 }
 0x19d   :  { %912 = vrot.lane.b32.xlu0 %v908_v4, %s1426_s12  ;;  %1040 = vrot.lane.b32.xlu1 %v1035_v5, %s1427_s13  ;;  %v787_v4 = vstv %s2008_s14 }
 0x19f   :  { %v671_v14 = vpop.permute.xlu0 %670  ;;  %v635_v27 = vpop.permute.xlu1 %634 }
 0x1a0   :  { %v676_v20 = vadd.f32 %v671_v14, %v662_v11  ;;  %v639_v22 = vadd.f32 %v635_v27, %v625_v13 }
 0x1a1   :  { %1052 = vrot.lane.b32.xlu0 %v1048_v16, %s1426_s12  ;;  %1180 = vrot.lane.b32.xlu1 %v1175_v17, %s1427_s13  ;;  %s2004_s13 = sld [smem:[#allocation7 + $0x3c]] }
 0x1a2   :  { %641 = vst.msk [vmem:[#allocation10 + $0xb] sm:$0x1] %vm219_vm3, %v639_v22  ;;  %v682_v25 = vadd.f32 %v680_v23, %v676_v20 }
 0x1a3   :  { %v691_v28 = vpop.permute.xlu0 %690  ;;  %v659_v29 = vpop.permute.xlu1 %658 }
 0x1a4   :  { %v696_v33 = vadd.f32 %v691_v28, %v682_v25  ;;  %v663_v35 = vadd.f32 %v659_v29, %v649_v32 }
 0x1a5   :  { %1192 = vrot.lane.b32.xlu0 %v1188_v30, %s1426_s12  ;;  %914 = vrot.lane.b32.xlu1 %v909_v31, %s1426_s12 }
 0x1a7   :  { %v705_v36 = vpop.permute.xlu0 %704  ;;  %v673_v38 = vpop.permute.xlu1 %672  ;;  %v783_v62 = vstv %s2004_s13 }
 0x1a8   :  { %v710_v39 = vadd.f32 %v705_v36, %v696_v33  ;;  %v677_v40 = vadd.f32 %v673_v38, %v663_v35  ;;  %v784_v0 = vmul.f32 %v1968_v60, %v783_v62  ;;  %v785_v12 = vmul.f32 %v1897_v61, %v783_v62 }
 0x1a9   :  { %1054 = vrot.lane.b32.xlu1 %v1049_v10, %s1426_s12 }
 0x1aa   :  { %v716_v43 = vadd.f32 %v714_v41, %v710_v39  ;;  %v683_v44 = vadd.f32 %v681_v42, %v677_v40  ;;  %v788_v9 = vadd.f32 %v787_v4, %v784_v0  ;;  %v789_v29 = vadd.f32 %v787_v4, %v785_v12 }
 0x1ab   :  { %v725_v45 = vpop.permute.xlu0 %724  ;;  %v693_v46 = vpop.permute.xlu1 %692  ;;  %v854_v40 = vmul.f32 %v1903_v1, %v853_v26  ;;  %v923_v41 = vstv %s2024_s16 }
 0x1ac   :  { %v730_v49 = vadd.f32 %v725_v45, %v716_v43  ;;  %v697_v50 = vadd.f32 %v693_v46, %v683_v44  ;;  %v924_v46 = vmul.f32 %v1968_v60, %v923_v41  ;;  %v925_v0 = vmul.f32 %v1897_v61, %v923_v41 }
 0x1ad   :  { %1194 = vrot.lane.b32.xlu1 %v1189_v47, %s1426_s12  ;;  %s2013_s12 = sld [smem:[#allocation7 + $0x3f]]  ;;  %v927_v47 = vstv %s2027_s17 }
 0x1af   :  { %v739_v7 = vpop.permute.xlu0 %738  ;;  %v707_v34 = vpop.permute.xlu1 %706 }
 0x1b0   :  { %v744_v51 = vadd.f32 %v739_v7, %v730_v49  ;;  %v711_v52 = vadd.f32 %v707_v34, %v697_v50  ;;  %v928_v34 = vadd.f32 %v927_v47, %v924_v46 }
 0x1b2   :  { %v750_v56 = vadd.f32 %v748_v53, %v744_v51  ;;  %v717_v19 = vadd.f32 %v715_v54, %v711_v52  ;;  %v1064_v51 = vmul.f32 %v1968_v60, %v1063_v48  ;;  %v855_v53 = vmul.f32 %v1916_v15, %v853_v26 }
 0x1b3   :  { %v759_v57 = vpop.permute.xlu0 %758  ;;  %v727_v58 = vpop.permute.xlu1 %726  ;;  %v819_v16 = vstv %s2013_s12  ;;  %v1067_v54 = vstv %s2035_s19 }
 0x1b4   :  { %v764_v18 = vadd.f32 %v759_v57, %v750_v56  ;;  %v731_v63 = vadd.f32 %v727_v58, %v717_v19  ;;  %v820_v25 = vmul.f32 %v1894_v59, %v819_v16  ;;  %v821_v39 = vmul.f32 %v1923_v21, %v819_v16 }
 0x1b5   :  { %v959_v56 = vstv %s2037_s20 }
 0x1b7   :  { %v773_v2 = vpop.permute.xlu0 %772  ;;  %v741_v3 = vpop.permute.xlu1 %740 }
 0x1b8   :  { %v778_v5 = vadd.f32 %v773_v2, %v764_v18  ;;  %v745_v6 = vadd.f32 %v741_v3, %v731_v63  ;;  %v1068_v18 = vadd.f32 %v1067_v54, %v1064_v51  ;;  %v960_v2 = vmul.f32 %v1894_v59, %v959_v56 }
 0x1b9   :  { %v1099_v3 = vstv %s2044_s21 }
 0x1ba   :  { %780 = vst.msk [vmem:[#allocation10 + $0x4] sm:$0x1] %vm219_vm3, %v778_v5  ;;  %v751_v11 = vadd.f32 %v749_v8, %v745_v6  ;;  %v929_v8 = vadd.f32 %v927_v47, %v925_v0  ;;  %v1027_v0 = vstv %s2071_s1 }
 0x1bb   :  { %v797_v13 = vpop.permute.xlu0 %796  ;;  %v761_v14 = vpop.permute.xlu1 %760 }
 0x1bc   :  { %v802_v27 = vadd.f32 %v797_v13, %v788_v9  ;;  %v765_v17 = vadd.f32 %v761_v14, %v751_v11  ;;  %v1065_v11 = vmul.f32 %v1897_v61, %v1063_v48  ;;  %v1100_v13 = vmul.f32 %v1894_v59, %v1099_v3 }
 0x1bd   :  { %v1101_v59 = vmul.f32 %v1923_v21, %v1099_v3 }
 0x1be   :  { %v1069_v12 = vadd.f32 %v1067_v54, %v1065_v11 }
 0x1bf   :  { %v811_v20 = vpop.permute.xlu0 %810  ;;  %v775_v22 = vpop.permute.xlu1 %774 }
 0x1c0   :  { %v816_v23 = vadd.f32 %v811_v20, %v802_v27  ;;  %v779_v24 = vadd.f32 %v775_v22, %v765_v17  ;;  %v961_v22 = vmul.f32 %v1923_v21, %v959_v56  ;;  %v887_v56 = vstv %s2068_s24 }
 0x1c2   :  { %781 = vst.msk [vmem:[#allocation10 + $0xc] sm:$0x1] %vm219_vm3, %v779_v24  ;;  %v822_v28 = vadd.f32 %v820_v25, %v816_v23 }
 0x1c3   :  { %v831_v30 = vpop.permute.xlu0 %830  ;;  %v799_v31 = vpop.permute.xlu1 %798 }
 0x1c4   :  { %v803_v32 = vadd.f32 %v799_v31, %v789_v29  ;;  %v836_v33 = vadd.f32 %v831_v30, %v822_v28  ;;  %v993_v29 = vstv %s2057_s22 }
 0x1c5   :  { %v995_v48 = vmul.f32 %v1916_v15, %v993_v29 }
 0x1c7   :  { %v845_v35 = vpop.permute.xlu0 %844  ;;  %v813_v36 = vpop.permute.xlu1 %812 }
 0x1c8   :  { %v850_v38 = vadd.f32 %v845_v35, %v836_v33  ;;  %v817_v10 = vadd.f32 %v813_v36, %v803_v32  ;;  %v994_v35 = vmul.f32 %v1903_v1, %v993_v29  ;;  %v1133_v36 = vstv %s2060_s23 }
 0x1ca   :  { %v823_v42 = vadd.f32 %v821_v39, %v817_v10  ;;  %v2039_v43 = vadd.f32 %v854_v40, %v850_v38 }
 0x1cb   :  { %v937_v44 = vpop.permute.xlu0 %936  ;;  %v833_v45 = vpop.permute.xlu1 %832 }
 0x1cc   :  { %v837_v49 = vadd.f32 %v833_v45, %v823_v42  ;;  %v942_v19 = vadd.f32 %v937_v44, %v928_v34  ;;  %v1134_v42 = vmul.f32 %v1903_v1, %v1133_v36 }
 0x1cf   :  { %v1077_v50 = vpop.permute.xlu0 %1076  ;;  %v847_v7 = vpop.permute.xlu1 %846 }
 0x1d0   :  { %v851_v52 = vadd.f32 %v847_v7, %v837_v49  ;;  %v1082_v4 = vadd.f32 %v1077_v50, %v1068_v18 }
 0x1d2   :  { %v2050_v57 = vadd.f32 %v855_v53, %v851_v52  ;;  %v1135_v52 = vmul.f32 %v1916_v15, %v1133_v36 }
 0x1d3   :  { %v951_v58 = vpop.permute.xlu0 %950  ;;  %v939_v62 = vpop.permute.xlu1 %938 }
 0x1d4   :  { %v956_v63 = vadd.f32 %v951_v58, %v942_v19  ;;  %v943_v14 = vadd.f32 %v939_v62, %v929_v8 }
 0x1d6   :  { %v962_v5 = vadd.f32 %v960_v2, %v956_v63  ;;  %v888_v63 = vmul.f32 %v1938_v37, %v887_v56 }
 0x1d7   :  { %v1091_v60 = vpop.permute.xlu0 %1090  ;;  %v1079_v6 = vpop.permute.xlu1 %1078 }
 0x1d8   :  { %v1096_v9 = vadd.f32 %v1091_v60, %v1082_v4  ;;  %v1083_v23 = vadd.f32 %v1079_v6, %v1069_v12  ;;  %v1028_v60 = vmul.f32 %v1938_v37, %v1027_v0  ;;  %v1167_v6 = vstv %s2074_s25 }
 0x1da   :  { %v1102_v27 = vadd.f32 %v1100_v13, %v1096_v9 }
 0x1db   :  { %v971_v16 = vpop.permute.xlu0 %970  ;;  %v953_v17 = vpop.permute.xlu1 %952 }
 0x1dc   :  { %v957_v20 = vadd.f32 %v953_v17, %v943_v14  ;;  %v976_v30 = vadd.f32 %v971_v16, %v962_v5  ;;  %v1168_v16 = vmul.f32 %v1938_v37, %v1167_v6  ;;  %v889_v17 = vmul.f32 %v1962_v55, %v887_v56 }
 0x1de   :  { %v963_v24 = vadd.f32 %v961_v22, %v957_v20 }
 0x1df   :  { %v1111_v25 = vpop.permute.xlu0 %1110  ;;  %v1093_v61 = vpop.permute.xlu1 %1092 }
 0x1e0   :  { %v1097_v28 = vadd.f32 %v1093_v61, %v1083_v23  ;;  %v1116_v38 = vadd.f32 %v1111_v25, %v1102_v27  ;;  %v1029_v61 = vmul.f32 %v1962_v55, %v1027_v0 }
 0x1e2   :  { %v1103_v31 = vadd.f32 %v1101_v59, %v1097_v28 }
 0x1e3   :  { %v985_v32 = vpop.permute.xlu0 %984  ;;  %v973_v26 = vpop.permute.xlu1 %972 }
 0x1e4   :  { %v990_v33 = vadd.f32 %v985_v32, %v976_v30  ;;  %v977_v44 = vadd.f32 %v973_v26, %v963_v24 }
 0x1e6   :  { %v996_v10 = vadd.f32 %v994_v35, %v990_v33 }
 0x1e7   :  { %v1125_v39 = vpop.permute.xlu0 %1124  ;;  %v1113_v40 = vpop.permute.xlu1 %1112 }
 0x1e8   :  { %v1130_v41 = vadd.f32 %v1125_v39, %v1116_v38  ;;  %v1117_v49 = vadd.f32 %v1113_v40, %v1103_v31  ;;  %v1169_v31 = vmul.f32 %v1962_v55, %v1167_v6 }
 0x1ea   :  { %v1136_v45 = vadd.f32 %v1134_v42, %v1130_v41 }
 0x1eb   :  { %v865_v46 = vpop.permute.xlu0 %864  ;;  %v987_v21 = vpop.permute.xlu1 %986 }
 0x1ec   :  { %v991_v47 = vadd.f32 %v987_v21, %v977_v44  ;;  %v870_v19 = vadd.f32 %v865_v46, %v2039_v43 }
 0x1ee   :  { %v997_v50 = vadd.f32 %v995_v48, %v991_v47 }
 0x1ef   :  { %v1005_v7 = vpop.permute.xlu0 %1004  ;;  %v1127_v34 = vpop.permute.xlu1 %1126 }
 0x1f0   :  { %v1131_v51 = vadd.f32 %v1127_v34, %v1117_v49  ;;  %v1010_v2 = vadd.f32 %v1005_v7, %v996_v10 }
 0x1f2   :  { %v1137_v1 = vadd.f32 %v1135_v52, %v1131_v51 }
 0x1f3   :  { %v1145_v53 = vpop.permute.xlu0 %1144  ;;  %v867_v54 = vpop.permute.xlu1 %866 }
 0x1f4   :  { %v1150_v8 = vadd.f32 %v1145_v53, %v1136_v45  ;;  %v871_v9 = vadd.f32 %v867_v54, %v2050_v57 }
 0x1f7   :  { %v879_v58 = vpop.permute.xlu0 %878  ;;  %v1007_v62 = vpop.permute.xlu1 %1006 }
 0x1f8   :  { %v884_v18 = vadd.f32 %v879_v58, %v870_v19  ;;  %v1011_v12 = vadd.f32 %v1007_v62, %v997_v50 }
 0x1fa   :  { %v890_v15 = vadd.f32 %v888_v63, %v884_v18 }
 0x1fb   :  { %v1019_v3 = vpop.permute.xlu0 %1018  ;;  %v1147_v4 = vpop.permute.xlu1 %1146 }
 0x1fc   :  { %v1024_v5 = vadd.f32 %v1019_v3, %v1010_v2  ;;  %v1151_v28 = vadd.f32 %v1147_v4, %v1137_v1 }
 0x1fe   :  { %v1030_v11 = vadd.f32 %v1028_v60, %v1024_v5 }
 0x1ff   :  { %v1159_v13 = vpop.permute.xlu0 %1158  ;;  %v881_v43 = vpop.permute.xlu1 %880 }
 0x200   :  { %v1164_v14 = vadd.f32 %v1159_v13, %v1150_v8  ;;  %v885_v27 = vadd.f32 %v881_v43, %v871_v9 }
 0x202   :  { %v1170_v20 = vadd.f32 %v1168_v16, %v1164_v14  ;;  %v891_v22 = vadd.f32 %v889_v17, %v885_v27 }
 0x203   :  { %v899_v23 = vpop.permute.xlu0 %898  ;;  %v1021_v24 = vpop.permute.xlu1 %1020 }
 0x204   :  { %v1025_v25 = vadd.f32 %v1021_v24, %v1011_v12  ;;  %v904_v33 = vadd.f32 %v899_v23, %v890_v15 }
 0x206   :  { %v1031_v59 = vadd.f32 %v1029_v61, %v1025_v25 }
 0x207   :  { %v1039_v57 = vpop.permute.xlu0 %1038  ;;  %v1161_v29 = vpop.permute.xlu1 %1160 }
 0x208   :  { %v1165_v30 = vadd.f32 %v1161_v29, %v1151_v28  ;;  %v1044_v10 = vadd.f32 %v1039_v57, %v1030_v11 }
 0x20a   :  { %v1171_v32 = vadd.f32 %v1169_v31, %v1165_v30 }
 0x20b   :  { %v1179_v26 = vpop.permute.xlu0 %1178  ;;  %v901_v37 = vpop.permute.xlu1 %900 }
 0x20c   :  { %v1184_v42 = vadd.f32 %v1179_v26, %v1170_v20  ;;  %v905_v44 = vadd.f32 %v901_v37, %v891_v22 }
 0x20f   :  { %v913_v35 = vpop.permute.xlu0 %912  ;;  %v1041_v36 = vpop.permute.xlu1 %1040 }
 0x210   :  { %v918_v38 = vadd.f32 %v913_v35, %v904_v33  ;;  %v1045_v47 = vadd.f32 %v1041_v36, %v1031_v59 }
 0x212   :  { %920 = vst.msk [vmem:[#allocation10 + $0x5] sm:$0x1] %vm219_vm3, %v918_v38 }
 0x213   :  { %v1053_v39 = vpop.permute.xlu0 %1052  ;;  %v1181_v40 = vpop.permute.xlu1 %1180 }
 0x214   :  { %v1058_v41 = vadd.f32 %v1053_v39, %v1044_v10  ;;  %v1185_v50 = vadd.f32 %v1181_v40, %v1171_v32 }
 0x216   :  { %1060 = vst.msk [vmem:[#allocation10 + $0x6] sm:$0x1] %vm219_vm3, %v1058_v41 }
 0x217   :  { %v1193_v45 = vpop.permute.xlu0 %1192  ;;  %v915_v46 = vpop.permute.xlu1 %914 }
 0x218   :  { %v1198_v55 = vadd.f32 %v1193_v45, %v1184_v42  ;;  %v919_v21 = vadd.f32 %v915_v46, %v905_v44 }
 0x21a   :  { %1200 = vst.msk [vmem:[#allocation10 + $0x7] sm:$0x1] %vm219_vm3, %v1198_v55  ;;  %921 = vst.msk [vmem:[#allocation10 + $0xd] sm:$0x1] %vm219_vm3, %v919_v21 }
 0x21b   :  { %v1055_v48 = vpop.permute.xlu1 %1054 }
 0x21c   :  { %v1059_v49 = vadd.f32 %v1055_v48, %v1045_v47 }
 0x21e   :  { %1061 = vst.msk [vmem:[#allocation10 + $0xe] sm:$0x1] %vm219_vm3, %v1059_v49 }
 0x21f   :  { %v1195_v7 = vpop.permute.xlu1 %1194 }
 0x220   :  { %v1199_v34 = vadd.f32 %v1195_v7, %v1185_v50 }
 0x222   :  { %1201 = vst.msk [vmem:[#allocation10 + $0xf] sm:$0x1] %vm219_vm3, %v1199_v34 }
 0x223   :  { %1400 = shalt.err (!%p1397_p8)
}
 0x224   :  { %s1401_s4 = scalar_lea.hbm %s2107_s3, 256 }
 0x225   :  { %p1402_p9 = scmp.ne.s32.totalorder %s2107_s3, %s1401_s4  ;;  %p1405_p10 = scmp.lt.u32.totalorder %s1401_s4, %s2107_s3 }
 0x227   :  { %p1407_p11 = pnand %p1405_p10, %p1402_p9 }
 0x229   :  { %1410 = shalt.err (!%p1407_p11)
}
 0x22a   :  { %s1429_s2 = smov 128   ;;  %s1430_s8 = smov 8  }
 0x22b   :  { %1213 = dma.vmem_to_hbm [thread:$0]  %s1208_s27, 256, %s2107_s3, [#allocation5], %s1429_s2, %s1429_s2, %s1430_s8  }
 0x22c   :  { %1417 = dma.done.wait [#allocation5], 256  }
 0x22d   :  { %1418 = vsyncadd [#allocation5], 4294967040 }
 0x22e   :  { %1217 = vsyncpa [#allocation4], 1 }
 0x22f   :  { %1218 = vsyncpa [#allocation5], 1 }
 0x230   :  { %1219 = vsyncpa [#allocation6], 1 }
 0x231   :  { %1220 = vsyncpa [#allocation9], 1 }

</bundles_post_ra>
